<compile_context>
chip_gen: v6e
topology: v6e:2x2x1
jax: 0.10.0
libtpu: 0.0.40
codegen_flags: <defaults>
</compile_context>

<pallas_src>
import functools

import jax
import jax.numpy as jnp
from jax.experimental import pallas as pl
from jax.experimental.pallas import tpu as pltpu

LENGTH = 33163
WIDTH = 376
STRIDE = LENGTH // WIDTH                  # 88
T_OUT = (LENGTH - 1) // STRIDE + 1        # 377 (every Inception branch)
T_PAD = 384                               # 377 padded to 3 * 128 lanes
PARALLEL = 4                              # only value consistent with BN/conv2 channels
C_INC = 4 * PARALLEL                      # 16 inception channels
KMAX = 15                                 # widest supported branch window
HALF = KMAX // 2                          # 7
FC_IN = T_OUT + WIDTH                     # 753 -> nn.Linear(753, 2)
RIGHT_PAD = T_OUT * STRIDE - LENGTH - HALF  # 6 (to make pad+reshape exact)
BN_EPS = 1e-5


def pnngs_kernel(pat_ref, x2_ref, w_ref, cp_ref, sel_ref, wa_ref, wb_ref,
                 scal_ref, out_ref):
    tb = pat_ref.shape[0]
    rows = tb * C_INC

    # ---- Inception1d: batched (16,15)@(15,384) matmul, time on lanes --------
    h = jnp.einsum("bcd,bdt->bct", w_ref[...], pat_ref[...],
                   preferred_element_type=jnp.float32)          # (tb, 16, 384)
    h = h.reshape(rows, T_PAD)                                  # rows = (b, c)

    cp = cp_ref[...]                                            # (tb*16, 8)
    # bias + ReLU (Dropout(0.3) is identity in eval mode)
    h = jnp.maximum(h + cp[:, 0:1], 0.0)
    # BatchNorm1d (eval mode, folded to per-channel scale/shift)
    h = h * cp[:, 1:2] + cp[:, 2:3]
    # zero the time-padding lanes (t >= 377) -> also provides conv2's zero pad
    t_idx = jax.lax.broadcasted_iota(jnp.int32, (1, T_PAD), 1)
    h = h * (t_idx < T_OUT).astype(jnp.float32)

    # ---- conv2: Conv1d(16->1, k=3, pad=1) -----------------------------------
    # per-channel 3-tap filter via lane shifts on the VPU ...
    zcol = jnp.zeros((rows, 1), jnp.float32)
    h_m1 = jnp.concatenate([zcol, h[:, :-1]], axis=1)           # value at t-1
    h_p1 = jnp.concatenate([h[:, 1:], zcol], axis=1)            # value at t+1
    z = cp[:, 3:4] * h_m1 + cp[:, 4:5] * h + cp[:, 5:6] * h_p1  # (tb*16, 384)
    # ... then one (tb, tb*16) 0/1 selector matmul sums the 16 channels per b.
    v = jnp.dot(sel_ref[...], z, preferred_element_type=jnp.float32)  # (tb,384)
    v = jnp.maximum(v + scal_ref[0], 0.0)                       # + bias, ReLU

    # ---- fc(753->2) o fc2(2->1) folded into one 753->1 linear ---------------
    fa = jnp.sum(v * wa_ref[...], axis=1, keepdims=True)        # conv part (377)
    fb = jnp.sum(x2_ref[...] * wb_ref[...], axis=1, keepdims=True)  # x2 part (376)
    out_ref[...] = fa + fb + scal_ref[1]                        # (tb, 1)


@functools.partial(jax.jit, static_argnames=("tb",))
def _forward(x, params, *, tb):
    B = x.shape[0]
    B_pad = ((B + tb - 1) // tb) * tb
    grid = B_pad // tb

    x1 = x[:, 0, :LENGTH]                                       # (B, 33163)
    x2 = x[:, 0, LENGTH:]                                       # (B, 376)

    # ---- 15-wide stride-88 windows: pad + reshape + slice (no gather) -------
    x1p = jnp.pad(x1, ((0, B_pad - B), (HALF, RIGHT_PAD)))      # (B_pad, 33176)
    pat = x1p.reshape(B_pad, T_OUT, STRIDE)[:, :, :KMAX]        # (B_pad, 377, 15)
    pat = jnp.transpose(pat, (0, 2, 1))                         # (B_pad, 15, 377)
    pat = jnp.pad(pat, ((0, 0), (0, 0), (0, T_PAD - T_OUT)))    # (B_pad, 15, 384)
    x2p = jnp.pad(x2, ((0, B_pad - B), (0, T_PAD - WIDTH)))     # (B_pad, 384)

    # ---- tile-size dependent packed operands --------------------------------
    wrep = jnp.broadcast_to(params["w_inc"][None], (tb, C_INC, KMAX))
    base = jnp.stack([params["b_inc"], params["bn_scale"], params["bn_shift"],
                      params["w2"][:, 0], params["w2"][:, 1], params["w2"][:, 2],
                      jnp.zeros((C_INC,), jnp.float32),
                      jnp.zeros((C_INC,), jnp.float32)], axis=1)  # (16, 8)
    chanpar = jnp.tile(base, (tb, 1))                             # (tb*16, 8)
    sel = jnp.repeat(jnp.eye(tb, dtype=jnp.float32), C_INC, axis=1)  # (tb, tb*16)
    wa = jnp.zeros((1, T_PAD), jnp.float32).at[0, :T_OUT].set(params["w_fold"][:T_OUT])
    wb = jnp.zeros((1, T_PAD), jnp.float32).at[0, :WIDTH].set(params["w_fold"][T_OUT:])
    scal = jnp.stack([params["b2"], params["b_fold"]]).astype(jnp.float32)  # (2,)

    out = pl.pallas_call(
        pnngs_kernel,
        out_shape=jax.ShapeDtypeStruct((B_pad, 1), jnp.float32),
        grid_spec=pltpu.PrefetchScalarGridSpec(
            num_scalar_prefetch=0,
            grid=(grid,),
            in_specs=[
                pl.BlockSpec((tb, KMAX, T_PAD), lambda i: (i, 0, 0)),   # patches
                pl.BlockSpec((tb, T_PAD), lambda i: (i, 0)),            # x2
                pl.BlockSpec((tb, C_INC, KMAX), lambda i: (0, 0, 0)),   # inception W
                pl.BlockSpec((tb * C_INC, 8), lambda i: (0, 0)),        # per-(b,c) params
                pl.BlockSpec((tb, tb * C_INC), lambda i: (0, 0)),       # channel-sum selector
                pl.BlockSpec((1, T_PAD), lambda i: (0, 0)),             # folded fc (conv part)
                pl.BlockSpec((1, T_PAD), lambda i: (0, 0)),             # folded fc (x2 part)
                pl.BlockSpec(memory_space=pltpu.MemorySpace.SMEM),      # [b2, b_fold]
            ],
            out_specs=pl.BlockSpec((tb, 1), lambda i: (i, 0)),
        ),
        compiler_params=pltpu.CompilerParams(
            dimension_semantics=("parallel",),
            vmem_limit_bytes=48 * 1024 * 1024),
    )(pat, x2p, wrep, chanpar, sel, wa, wb, scal)
    return out[:B]                                               # (B, 1)


def pnngs_forward(x, params, tb=None):
    """x: (B, 1, LENGTH + WIDTH) float32 -> (B, 1) float32."""
    assert x.shape[-1] == LENGTH + WIDTH
    B = x.shape[0]
    if tb is None:
        # 128 keeps double-buffered VMEM well under the v7x 64 MiB budget and
        # gives multiple parallel grid steps once B >= 256.
        tb = 128 if B >= 128 else max(8, -(-B // 8) * 8)
    return _forward(x, params, tb=tb)


def init_params(key):
    keys = jax.random.split(key, 20)

    def normal(k, shape, scale=0.1):
        return scale * jax.random.normal(k, shape, jnp.float32)

    # Inception branches used for parallel_number=4: k=1(1ch), 3,5,7(5ch each)
    branch_specs = [(1, 1), (3, 5), (5, 5), (7, 5)]
    w_inc = jnp.zeros((C_INC, KMAX), jnp.float32)
    b_list = []
    col, ki = 0, 0
    for (k, c) in branch_specs:
        w = normal(keys[ki], (c, 1, k)); ki += 1            # torch Conv1d weight
        b = normal(keys[ki], (c,)); ki += 1
        pk = (k - 1) // 2
        w_inc = w_inc.at[col:col + c, HALF - pk:HALF + pk + 1].set(w[:, 0, :])
        b_list.append(b)
        col += c
    b_inc = jnp.concatenate(b_list)                         # (16,)

    # BatchNorm1d(16), eval mode, folded
    gamma = 1.0 + normal(keys[ki], (C_INC,)); ki += 1
    beta = normal(keys[ki], (C_INC,)); ki += 1
    r_mean = normal(keys[ki], (C_INC,)); ki += 1
    r_var = 0.5 + jax.random.uniform(keys[ki], (C_INC,), jnp.float32); ki += 1
    bn_scale = gamma / jnp.sqrt(r_var + BN_EPS)
    bn_shift = beta - r_mean * bn_scale

    # conv2: Conv1d(16 -> 1, k=3, pad=1)
    w2 = normal(keys[ki], (1, C_INC, 3))[0]; ki += 1        # (16, 3)
    b2 = normal(keys[ki], (1,))[0]; ki += 1                 # scalar

    # fc(753 -> 2) and fc2(2 -> 1), folded into one 753 -> 1 linear
    wfc = 0.01 * jax.random.normal(keys[ki], (2, FC_IN), jnp.float32); ki += 1
    bfc = normal(keys[ki], (2,)); ki += 1
    wfc2 = 0.01 * jax.random.normal(keys[ki], (1, 2), jnp.float32); ki += 1
    bfc2 = normal(keys[ki], (1,)); ki += 1
    w_fold = (wfc2 @ wfc)[0]                                # (753,)
    b_fold = (wfc2 @ bfc)[0] + bfc2[0]                      # scalar

    return dict(w_inc=w_inc, b_inc=b_inc, bn_scale=bn_scale, bn_shift=bn_shift,
                w2=w2, b2=b2, w_fold=w_fold, b_fold=b_fold)


def reference_forward(x, params):
    """Pure-JAX reference (same eval-mode semantics), for a numeric check."""
    x1 = x[:, :, :LENGTH]                                   # (B, 1, L)
    x2 = x[:, 0, LENGTH:]                                   # (B, 376)
    w = params["w_inc"][:, None, :]                         # (16, 1, 15)
    h = jax.lax.conv_general_dilated(
        x1, w, window_strides=(STRIDE,), padding=[(HALF, HALF)],
        dimension_numbers=("NCH", "OIH", "NCH"))            # (B, 16, 377)
    h = jnp.maximum(h + params["b_inc"][None, :, None], 0.0)
    h = h * params["bn_scale"][None, :, None] + params["bn_shift"][None, :, None]
    v = jax.lax.conv_general_dilated(
        h, params["w2"][None, :, :], window_strides=(1,), padding=[(1, 1)],
        dimension_numbers=("NCH", "OIH", "NCH"))            # (B, 1, 377)
    v = jnp.maximum(v[:, 0, :] + params["b2"], 0.0)
    feat = jnp.concatenate([v, x2], axis=1)                 # (B, 753)
    return feat @ params["w_fold"][:, None] + params["b_fold"]


if __name__ == "__main__":
    key = jax.random.PRNGKey(0)
    kx, kp = jax.random.split(key)
    B = 2
    x = jax.random.normal(kx, (B, 1, LENGTH + WIDTH), jnp.float32)  # (2, 1, 33539)
    params = init_params(kp)

    out = pnngs_forward(x, params)
    out = jax.block_until_ready(out)
    ref = reference_forward(x, params)

    assert out.shape == (B, 1)
    assert bool(jnp.all(jnp.isfinite(out)))
    assert jnp.allclose(out, ref, rtol=2e-3, atol=2e-3), (out, ref)
    print("KERNEL_OK")
</pallas_src>

<mosaic_0001>
module attributes {stable_mosaic.version = 11 : i64} {
  func.func @pnngs_kernel(%arg0: i32, %arg1: memref<8x15x384xf32, #tpu.memory_space<vmem>>, %arg2: memref<8x384xf32, #tpu.memory_space<vmem>>, %arg3: memref<8x16x15xf32, #tpu.memory_space<vmem>>, %arg4: memref<128x8xf32, #tpu.memory_space<vmem>>, %arg5: memref<8x128xf32, #tpu.memory_space<vmem>>, %arg6: memref<1x384xf32, #tpu.memory_space<vmem>>, %arg7: memref<1x384xf32, #tpu.memory_space<vmem>>, %arg8: memref<2xf32, #tpu.memory_space<smem>>, %arg9: memref<8x1xf32, #tpu.memory_space<vmem>>) attributes {dimension_semantics = [#tpu.dimension_semantics<parallel>], iteration_bounds = array<i64: 1>, scalar_prefetch = 0 : i64, scratch_operands = 0 : i64, tpu.core_type = #tpu.core_type<tc>, window_params = [{transform_indices = @transform_0, window_bounds = array<i64: 8, 15, 384>}, {transform_indices = @transform_1, window_bounds = array<i64: 8, 384>}, {pipeline_mode = #tpu.pipeline_mode<synchronous>, transform_indices = @transform_2, window_bounds = array<i64: 8, 16, 15>}, {pipeline_mode = #tpu.pipeline_mode<synchronous>, transform_indices = @transform_3, window_bounds = array<i64: 128, 8>}, {pipeline_mode = #tpu.pipeline_mode<synchronous>, transform_indices = @transform_4, window_bounds = array<i64: 8, 128>}, {pipeline_mode = #tpu.pipeline_mode<synchronous>, transform_indices = @transform_5, window_bounds = array<i64: 1, 384>}, {pipeline_mode = #tpu.pipeline_mode<synchronous>, transform_indices = @transform_6, window_bounds = array<i64: 1, 384>}, {transform_indices = @transform_7, window_bounds = array<i64: 2>}, {transform_indices = @transform_8, window_bounds = array<i64: 8, 1>}]} {
    %c0 = arith.constant 0 : index
    %c0_0 = arith.constant 0 : index
    %c0_1 = arith.constant 0 : index
    %0 = vector.load %arg3[%c0, %c0_0, %c0_1] : memref<8x16x15xf32, #tpu.memory_space<vmem>>, vector<8x16x15xf32>
    %c0_2 = arith.constant 0 : index
    %c0_3 = arith.constant 0 : index
    %c0_4 = arith.constant 0 : index
    %1 = vector.load %arg1[%c0_2, %c0_3, %c0_4] : memref<8x15x384xf32, #tpu.memory_space<vmem>>, vector<8x15x384xf32>
    "tpu.trace_start"() <{level = 10 : i32, message = "bcd,bdt->bct"}> : () -> ()
    %cst = arith.constant dense<0.000000e+00> : vector<8x16x384xf32>
    %2 = tpu.matmul %0, %1, %cst {dimension_numbers = #tpu.dot_dimension_numbers<[2], [1], [1], [2], [0, 0, 0, 1, 1, 2], [0], [0]>} : vector<8x16x15xf32>, vector<8x15x384xf32>, vector<8x16x384xf32> -> vector<8x16x384xf32>
    "tpu.trace_stop"() : () -> ()
    %3 = vector.shape_cast %2 : vector<8x16x384xf32> to vector<128x384xf32>
    %c0_5 = arith.constant 0 : index
    %c0_6 = arith.constant 0 : index
    %4 = vector.load %arg4[%c0_5, %c0_6] : memref<128x8xf32, #tpu.memory_space<vmem>>, vector<128x8xf32>
    %5 = vector.extract_strided_slice %4 {offsets = [0, 0], sizes = [128, 1], strides = [1, 1]} : vector<128x8xf32> to vector<128x1xf32>
    %6 = vector.broadcast %5 : vector<128x1xf32> to vector<128x384xf32>
    %7 = arith.addf %3, %6 : vector<128x384xf32>
    %cst_7 = arith.constant 0.000000e+00 : f32
    %8 = vector.broadcast %cst_7 : f32 to vector<128x384xf32>
    %9 = arith.maximumf %7, %8 : vector<128x384xf32>
    %10 = vector.extract_strided_slice %4 {offsets = [0, 1], sizes = [128, 1], strides = [1, 1]} : vector<128x8xf32> to vector<128x1xf32>
    %11 = vector.broadcast %10 : vector<128x1xf32> to vector<128x384xf32>
    %12 = arith.mulf %9, %11 : vector<128x384xf32>
    %13 = vector.extract_strided_slice %4 {offsets = [0, 2], sizes = [128, 1], strides = [1, 1]} : vector<128x8xf32> to vector<128x1xf32>
    %14 = vector.broadcast %13 : vector<128x1xf32> to vector<128x384xf32>
    %15 = arith.addf %12, %14 : vector<128x384xf32>
    %16 = tpu.iota {dimensions = array<i32: 1>} : vector<1x384xi32>
    %c377_i32 = arith.constant 377 : i32
    %17 = vector.broadcast %c377_i32 : i32 to vector<1x384xi32>
    %18 = arith.cmpi slt, %16, %17 : vector<1x384xi32>
    %19 = arith.extui %18 : vector<1x384xi1> to vector<1x384xi32>
    %20 = arith.sitofp %19 : vector<1x384xi32> to vector<1x384xf32>
    %21 = vector.broadcast %20 : vector<1x384xf32> to vector<128x384xf32>
    %22 = arith.mulf %15, %21 : vector<128x384xf32>
    %cst_8 = arith.constant 0.000000e+00 : f32
    %23 = vector.broadcast %cst_8 : f32 to vector<128x1xf32>
    %24 = vector.extract_strided_slice %22 {offsets = [0, 0], sizes = [128, 383], strides = [1, 1]} : vector<128x384xf32> to vector<128x383xf32>
    %25 = tpu.concatenate %23, %24 in 1 : vector<128x1xf32>, vector<128x383xf32> -> vector<128x384xf32>
    %26 = vector.extract_strided_slice %22 {offsets = [0, 1], sizes = [128, 383], strides = [1, 1]} : vector<128x384xf32> to vector<128x383xf32>
    %27 = tpu.concatenate %26, %23 in 1 : vector<128x383xf32>, vector<128x1xf32> -> vector<128x384xf32>
    %28 = vector.extract_strided_slice %4 {offsets = [0, 3], sizes = [128, 1], strides = [1, 1]} : vector<128x8xf32> to vector<128x1xf32>
    %29 = vector.broadcast %28 : vector<128x1xf32> to vector<128x384xf32>
    %30 = arith.mulf %29, %25 : vector<128x384xf32>
    %31 = vector.extract_strided_slice %4 {offsets = [0, 4], sizes = [128, 1], strides = [1, 1]} : vector<128x8xf32> to vector<128x1xf32>
    %32 = vector.broadcast %31 : vector<128x1xf32> to vector<128x384xf32>
    %33 = arith.mulf %32, %22 : vector<128x384xf32>
    %34 = arith.addf %30, %33 : vector<128x384xf32>
    %35 = vector.extract_strided_slice %4 {offsets = [0, 5], sizes = [128, 1], strides = [1, 1]} : vector<128x8xf32> to vector<128x1xf32>
    %36 = vector.broadcast %35 : vector<128x1xf32> to vector<128x384xf32>
    %37 = arith.mulf %36, %27 : vector<128x384xf32>
    %38 = arith.addf %34, %37 : vector<128x384xf32>
    %c0_9 = arith.constant 0 : index
    %c0_10 = arith.constant 0 : index
    %39 = vector.load %arg5[%c0_9, %c0_10] : memref<8x128xf32, #tpu.memory_space<vmem>>, vector<8x128xf32>
    %cst_11 = arith.constant dense<0.000000e+00> : vector<8x384xf32>
    %40 = tpu.matmul %39, %38, %cst_11 {dimension_numbers = #tpu.dot_dimension_numbers<[1], [0], [0], [1], [0, 0, 1, 1], [], []>} : vector<8x128xf32>, vector<128x384xf32>, vector<8x384xf32> -> vector<8x384xf32>
    %c0_12 = arith.constant 0 : index
    %41 = memref.load %arg8[%c0_12] : memref<2xf32, #tpu.memory_space<smem>>
    %42 = vector.broadcast %41 : f32 to vector<8x384xf32>
    %43 = arith.addf %40, %42 : vector<8x384xf32>
    %cst_13 = arith.constant 0.000000e+00 : f32
    %44 = vector.broadcast %cst_13 : f32 to vector<8x384xf32>
    %45 = arith.maximumf %43, %44 : vector<8x384xf32>
    %c0_14 = arith.constant 0 : index
    %c0_15 = arith.constant 0 : index
    %46 = vector.load %arg6[%c0_14, %c0_15] : memref<1x384xf32, #tpu.memory_space<vmem>>, vector<1x384xf32>
    %47 = vector.broadcast %46 : vector<1x384xf32> to vector<8x384xf32>
    %48 = arith.mulf %45, %47 : vector<8x384xf32>
    %cst_16 = arith.constant dense<0.000000e+00> : vector<8xf32>
    %49 = vector.multi_reduction <add>, %48, %cst_16 [1] : vector<8x384xf32> to vector<8xf32>
    %50 = vector.shape_cast %49 : vector<8xf32> to vector<8x1xf32>
    %c0_17 = arith.constant 0 : index
    %c0_18 = arith.constant 0 : index
    %51 = vector.load %arg2[%c0_17, %c0_18] : memref<8x384xf32, #tpu.memory_space<vmem>>, vector<8x384xf32>
    %c0_19 = arith.constant 0 : index
    %c0_20 = arith.constant 0 : index
    %52 = vector.load %arg7[%c0_19, %c0_20] : memref<1x384xf32, #tpu.memory_space<vmem>>, vector<1x384xf32>
    %53 = vector.broadcast %52 : vector<1x384xf32> to vector<8x384xf32>
    %54 = arith.mulf %51, %53 : vector<8x384xf32>
    %cst_21 = arith.constant dense<0.000000e+00> : vector<8xf32>
    %55 = vector.multi_reduction <add>, %54, %cst_21 [1] : vector<8x384xf32> to vector<8xf32>
    %56 = vector.shape_cast %55 : vector<8xf32> to vector<8x1xf32>
    %57 = arith.addf %50, %56 : vector<8x1xf32>
    %c1 = arith.constant 1 : index
    %58 = memref.load %arg8[%c1] : memref<2xf32, #tpu.memory_space<smem>>
    %59 = vector.broadcast %58 : f32 to vector<8x1xf32>
    %60 = arith.addf %57, %59 : vector<8x1xf32>
    %c0_22 = arith.constant 0 : index
    %c0_23 = arith.constant 0 : index
    %61 = vector.load %arg9[%c0_22, %c0_23] : memref<8x1xf32, #tpu.memory_space<vmem>>, vector<8x1xf32>
    tpu.vector_store %arg9[%c0_22, %c0_23], %60 {strides = array<i32>} : memref<8x1xf32, #tpu.memory_space<vmem>>, vector<8x1xf32>,
    return
  }
  func.func @transform_0(%arg0: i32) -> (i32, i32, i32) {
    %c0_i32 = arith.constant 0 : i32
    %c0_i32_0 = arith.constant 0 : i32
    %c0_i32_1 = arith.constant 0 : i32
    return %arg0, %c0_i32, %c0_i32_0 : i32, i32, i32
  }
  func.func @transform_1(%arg0: i32) -> (i32, i32) {
    %c0_i32 = arith.constant 0 : i32
    %c0_i32_0 = arith.constant 0 : i32
    return %arg0, %c0_i32 : i32, i32
  }
  func.func @transform_2(%arg0: i32) -> (i32, i32, i32) {
    %c0_i32 = arith.constant 0 : i32
    %c0_i32_0 = arith.constant 0 : i32
    %c0_i32_1 = arith.constant 0 : i32
    %c0_i32_2 = arith.constant 0 : i32
    return %c0_i32, %c0_i32_0, %c0_i32_1 : i32, i32, i32
  }
  func.func @transform_3(%arg0: i32) -> (i32, i32) {
    %c0_i32 = arith.constant 0 : i32
    %c0_i32_0 = arith.constant 0 : i32
    %c0_i32_1 = arith.constant 0 : i32
    return %c0_i32, %c0_i32_0 : i32, i32
  }
  func.func @transform_4(%arg0: i32) -> (i32, i32) {
    %c0_i32 = arith.constant 0 : i32
    %c0_i32_0 = arith.constant 0 : i32
    %c0_i32_1 = arith.constant 0 : i32
    return %c0_i32, %c0_i32_0 : i32, i32
  }
  func.func @transform_5(%arg0: i32) -> (i32, i32) {
    %c0_i32 = arith.constant 0 : i32
    %c0_i32_0 = arith.constant 0 : i32
    %c0_i32_1 = arith.constant 0 : i32
    return %c0_i32, %c0_i32_0 : i32, i32
  }
  func.func @transform_6(%arg0: i32) -> (i32, i32) {
    %c0_i32 = arith.constant 0 : i32
    %c0_i32_0 = arith.constant 0 : i32
    %c0_i32_1 = arith.constant 0 : i32
    return %c0_i32, %c0_i32_0 : i32, i32
  }
  func.func @transform_7(%arg0: i32) -> i32 {
    %c0_i32 = arith.constant 0 : i32
    %c0_i32_0 = arith.constant 0 : i32
    return %c0_i32 : i32
  }
  func.func @transform_8(%arg0: i32) -> (i32, i32) {
    %c0_i32 = arith.constant 0 : i32
    %c0_i32_0 = arith.constant 0 : i32
    return %arg0, %c0_i32 : i32, i32
  }
}

</mosaic_0001>

<bundles_post_ra>
// kernel: _forward.1
= control target key start
LH: loop header
LB: loop body
LE: loop exit
PB: predicated region body
PF: predicated region fallthrough
CT: control target
= control target key end

     0   :  { %13 = vsyncpa [#allocation3], 0  ;;  %s5057_s0 = inlined_call_operand.vmem [shape: f32[8,15,384], index: 0, kind: input, shape index: {}]   ;;  %s5058_s1 = inlined_call_operand.vmem [shape: f32[8,384], index: 1, kind: input, shape index: {}]   ;;  %s5059_s2 = inlined_call_operand.vmem [shape: f32[8,16,15], index: 2, kind: input, shape index: {}]   ;;  %s5060_s3 = inlined_call_operand.vmem [shape: f32[128,8], index: 3, kind: input, shape index: {}]   ;;  %s5061_s4 = inlined_call_operand.vmem [shape: f32[8,128], index: 4, kind: input, shape index: {}]   ;;  %s5062_s5 = inlined_call_operand.vmem [shape: f32[1,384], index: 5, kind: input, shape index: {}]   ;;  %s5063_s6 = inlined_call_operand.vmem [shape: f32[1,384], index: 6, kind: input, shape index: {}]   ;;  %s5064_s7 = inlined_call_operand.vmem [shape: f32[2], index: 7, kind: input, shape index: {}]   ;;  %s5065_s8 = inlined_call_operand.vmem [shape: f32[8,1], index: 8, kind: output, shape index: {}]  }
   0x1   :  { %s34_s29 = sshll.u32 %s5064_s7, 4  ;;  %s35_s29 = int_to_ptr.vmem [resolvable:$true] %s34_s29 }
   0x2   :  { %s3244_s30 = scalar_lea.vmem %s35_s29, 16  ;;  %p3249_p1 = scmp.lt.s32.totalorder %s35_s29, %s35_s29 }
   0x3   :  { %p3245_p0 = scmp.ne.s32.totalorder %s35_s29, %s3244_s30  ;;  %p3250_p2 = scmp.lt.s32.totalorder %s3244_s30, %s3244_s30 }
   0x5   :  { %p3251_p3 = por %p3250_p2, %p3249_p1 }
   0x7   :  { %p3252_p4 = pnand %p3251_p3, %p3245_p0 }
   0x9   :  { %3255 = shalt.err (!%p3252_p4)
}
   0xa   :  { %s3258_s9 = smov [#allocation2]  }
   0xb   :  { %37 = dma.vmem_to_smem %s35_s29, 16, %s3258_s9, [#allocation3]  }
   0xc   :  { %3256 = dma.done.wait [#allocation3], 16  }
   0xd   :  { %3257 = vsyncadd [#allocation3], 4294967280 }
   0xe   :  { %41 = sfence }
   0xf   :  { %v62_v0 = vld [vmem:[%s5057_s0 + $0x20] sm:$0x7f]  ;;  %vm113_vm0 = vcmask 1046528   ;;  %v63_v1 = vld [vmem:[%s5057_s0 + $0x28] sm:$0x7f]  ;;  %v3259_v2 = vmov 0  }
  0x10   :  { %3205 = vset.pattern.permute.xlu1 %v3259_v2  ;;  %3204 = vset.pattern.permute.xlu0 %v3259_v2  ;;  %v3326_v3 = vld [vmem:[%s5060_s3 + $0x10] sm:$0xff]  ;;  %v3331_v4 = vld [vmem:[%s5060_s3] sm:$0xff]  ;;  %v61_v5 = vld [vmem:[%s5057_s0 + $0x18] sm:$0x7f]  ;;  %vm106_vm1 = vcmask 121856   ;;  %v5067_v11 = vmov 0.0  }
  0x11   :  { %2995 = vmatprep.subr.msk.mxu0 %vm113_vm0, %v62_v0  ;;  %3102 = vmatprep.subr.msk.mxu1 %vm113_vm0, %v63_v1  ;;  %v59_v6 = vld [vmem:[%s5057_s0 + $0x8] sm:$0xff]  ;;  %v60_v7 = vld [vmem:[%s5057_s0 + $0x10] sm:$0xff]  ;;  %v58_v8 = vld [vmem:[%s5057_s0] sm:$0xff]  ;;  %v3261_v0 = vmov 1   ;;  %vm2065_vm3 = vcmask 7168   ;;  %vm2258_vm4 = vcmask 1039360  }
  0x12   :  { %1472 = vperm.xlu1 %3205, %v3326_v3   ;;  %1462 = vperm.xlu0 %3204, %v3331_v4   ;;  %v42_v9 = vld [vmem:[%s5059_s2] sm:$0xff]  ;;  %v43_v10 = vld [vmem:[%s5059_s2 + $0x8] sm:$0xff]  ;;  %v68_v12 = vld [vmem:[%s5057_s0 + $0x50] sm:$0x7f]  ;;  %vm3268_vm5 = vmmov 0  }
  0x13   :  { %2996 = vmatpush1.msk.msra.mxu0 %vm113_vm0, %v61_v5  ;;  %3103 = vmatpush3.msk.msra.mxu1 %vm113_vm0, %v63_v1  ;;  %v3364_v13 = vld [vmem:[%s5060_s3 + $0x18] sm:$0xff]  ;;  %v3370_v14 = vld [vmem:[%s5060_s3 + $0x8] sm:$0xff]  ;;  %v64_v17 = vld [vmem:[%s5057_s0 + $0x30] sm:$0xff] }
  0x14   :  { %153 = vmatprep.subr.mxu0 %v59_v6  ;;  %3104 = vmatprep.subr.mxu1 %v60_v7  ;;  %v67_v15 = vld [vmem:[%s5057_s0 + $0x48] sm:$0x7f]  ;;  %v65_v16 = vld [vmem:[%s5057_s0 + $0x38] sm:$0xff]  ;;  %v44_v18 = vld [vmem:[%s5059_s2 + $0x10] sm:$0xff] }
  0x15   :  { %154 = vmatpush1.msra.mxu0 %v58_v8  ;;  %187 = vmatprep.mubr.f32.mxu0 %v5067_v11  ;;  %v69_v19 = vld [vmem:[%s5057_s0 + $0x58] sm:$0x7f]  ;;  %v75_v20 = vld [vmem:[%s5057_s0 + $0x88] sm:$0x7f]  ;;  %v3406_v22 = vld [vmem:[%s5060_s3 + $0x20] sm:$0xff] }
  0x16   :  { %3105 = vmatpush3.msra.mxu1 %v60_v7  ;;  %3106 = vmatprep.mubr.msk.f32.mxu1 %vm106_vm1, %v42_v9  ;;  %v3401_v21 = vld [vmem:[%s5060_s3 + $0x28] sm:$0xff]  ;;  %v66_v23 = vld [vmem:[%s5057_s0 + $0x40] sm:$0xff]  ;;  %v45_v24 = vld [vmem:[%s5059_s2 + $0x18] sm:$0xff] }
  0x17   :  { %2997 = vmatmul.mubr.msk.f32.vlgmr.msra.gmra.mxu0 %vm106_vm1, %v42_v9  ;;  %3107 = vmatmul.mubr.msk.f32.vlgmr.msra.gmra.mxu1 %vm106_vm1, %v43_v10  ;;  %v74_v25 = vld [vmem:[%s5057_s0 + $0x80] sm:$0x7f]  ;;  %v72_v26 = vld [vmem:[%s5057_s0 + $0x70] sm:$0xff]  ;;  %v3433_v27 = vld [vmem:[%s5060_s3 + $0x38] sm:$0xff] }
  0x18   :  { %3002 = vmatprep.subr.msk.mxu1 %vm113_vm0, %v68_v12  ;;  %1477 = vperm.xlu1 %3205, %v3364_v13   ;;  %v3438_v28 = vld [vmem:[%s5060_s3 + $0x30] sm:$0xff]  ;;  %v73_v29 = vld [vmem:[%s5057_s0 + $0x78] sm:$0x7f]  ;;  %v71_v30 = vld [vmem:[%s5057_s0 + $0x68] sm:$0xff] }
  0x19   :  { %1467 = vperm.xlu0 %3204, %v3370_v14   ;;  %3003 = vmatpush1.msk.msra.mxu1 %vm113_vm0, %v67_v15  ;;  %v70_v31 = vld [vmem:[%s5057_s0 + $0x60] sm:$0xff]  ;;  %v47_v33 = vld [vmem:[%s5059_s2 + $0x28] sm:$0xff]  ;;  %v80_v34 = vld [vmem:[%s5057_s0 + $0xb0] sm:$0x7f] }
  0x1a   :  { %320 = vmatprep.subr.mxu1 %v65_v16  ;;  %193 = vmatprep.mubr.f32.mxu0 %v5067_v11  ;;  %v46_v32 = vld [vmem:[%s5059_s2 + $0x20] sm:$0xff]  ;;  %v3468_v35 = vld [vmem:[%s5060_s3 + $0x48] sm:$0xff]  ;;  %v77_v38 = vld [vmem:[%s5057_s0 + $0x98] sm:$0xff] }
  0x1b   :  { %321 = vmatpush1.msra.mxu1 %v64_v17  ;;  %354 = vmatprep.mubr.f32.mxu1 %v5067_v11  ;;  %v3474_v36 = vld [vmem:[%s5060_s3 + $0x40] sm:$0xff]  ;;  %v79_v37 = vld [vmem:[%s5057_s0 + $0xa8] sm:$0x7f]  ;;  %v76_v39 = vld [vmem:[%s5057_s0 + $0x90] sm:$0xff] }
  0x1c   :  { %2998 = vmatmul.mubr.msk.f32.gmra.mxu0 %vm106_vm1, %v43_v10  ;;  %3004 = vmatmul.mubr.msk.f32.vlgmr.msra.gmra.mxu1 %vm106_vm1, %v44_v18  ;;  %v48_v40 = vld [vmem:[%s5059_s2 + $0x30] sm:$0xff]  ;;  %v81_v41 = vld [vmem:[%s5057_s0 + $0xb8] sm:$0x7f]  ;;  %v87_v42 = vld [vmem:[%s5057_s0 + $0xe8] sm:$0x7f] }
  0x1d   :  { %3109 = vmatprep.subr.msk.mxu0 %vm113_vm0, %v69_v19  ;;  %3116 = vmatprep.subr.msk.mxu1 %vm113_vm0, %v75_v20  ;;  %v3505_v43 = vld [vmem:[%s5060_s3 + $0x58] sm:$0xff]  ;;  %v3510_v44 = vld [vmem:[%s5060_s3 + $0x50] sm:$0xff]  ;;  %v78_v45 = vld [vmem:[%s5057_s0 + $0xa0] sm:$0xff] }
  0x1e   :  { %1487 = vperm.xlu1 %3205, %v3401_v21   ;;  %1482 = vperm.xlu0 %3204, %v3406_v22   ;;  %v49_v46 = vld [vmem:[%s5059_s2 + $0x38] sm:$0xff]  ;;  %v86_v47 = vld [vmem:[%s5057_s0 + $0xe0] sm:$0x7f]  ;;  %v84_v48 = vld [vmem:[%s5057_s0 + $0xd0] sm:$0xff] }
  0x1f   :  { %3110 = vmatpush3.msk.msra.mxu0 %vm113_vm0, %v69_v19  ;;  %3117 = vmatpush3.msk.msra.mxu1 %vm113_vm0, %v75_v20  ;;  %v3537_v49 = vld [vmem:[%s5060_s3 + $0x68] sm:$0xff]  ;;  %v3542_v50 = vld [vmem:[%s5060_s3 + $0x60] sm:$0xff]  ;;  %v85_v51 = vld [vmem:[%s5057_s0 + $0xd8] sm:$0x7f] }
  0x20   :  { %3111 = vmatprep.subr.mxu0 %v66_v23  ;;  %360 = vmatprep.mubr.f32.mxu1 %v5067_v11  ;;  %v83_v52 = vld [vmem:[%s5057_s0 + $0xc8] sm:$0xff]  ;;  %v82_v53 = vld [vmem:[%s5057_s0 + $0xc0] sm:$0xff]  ;;  %v92_v56 = vld [vmem:[%s5057_s0 + $0x110] sm:$0x7f] }
  0x21   :  { %3112 = vmatpush3.msra.mxu0 %v66_v23  ;;  %3113 = vmatprep.mubr.msk.f32.mxu0 %vm106_vm1, %v44_v18  ;;  %v50_v54 = vld [vmem:[%s5059_s2 + $0x40] sm:$0xff]  ;;  %v51_v55 = vld [vmem:[%s5059_s2 + $0x48] sm:$0xff]  ;;  %v3572_v57 = vld [vmem:[%s5060_s3 + $0x78] sm:$0xff] }
  0x22   :  { %3005 = vmatmul.mubr.msk.f32.gmra.mxu1 %vm106_vm1, %v45_v24  ;;  %3114 = vmatmul.mubr.msk.f32.vlgmr.msra.gmra.mxu0 %vm106_vm1, %v45_v24  ;;  %v3578_v58 = vld [vmem:[%s5060_s3 + $0x70] sm:$0xff]  ;;  %v91_v59 = vld [vmem:[%s5057_s0 + $0x108] sm:$0x7f]  ;;  %v89_v60 = vld [vmem:[%s5057_s0 + $0xf8] sm:$0xff] }
  0x23   :  { %3009 = vmatprep.subr.msk.mxu0 %vm113_vm0, %v74_v25  ;;  %3118 = vmatprep.subr.mxu1 %v72_v26  ;;  %v88_v61 = vld [vmem:[%s5057_s0 + $0xf0] sm:$0xff]  ;;  %v93_v63 = vld [vmem:[%s5057_s0 + $0x118] sm:$0x7f]  ;;  %v90_v1 = vld [vmem:[%s5057_s0 + $0x100] sm:$0xff] }
  0x24   :  { %1497 = vperm.xlu1 %3205, %v3433_v27   ;;  %1492 = vperm.xlu0 %3204, %v3438_v28   ;;  %v52_v62 = vld [vmem:[%s5059_s2 + $0x50] sm:$0xff]  ;;  %v53_v2 = vld [vmem:[%s5059_s2 + $0x58] sm:$0xff]  ;;  %v98_v5 = vld [vmem:[%s5057_s0 + $0x140] sm:$0x7f] }
  0x25   :  { %3010 = vmatpush1.msk.msra.mxu0 %vm113_vm0, %v73_v29  ;;  %3119 = vmatpush3.msra.mxu1 %v72_v26  ;;  %v99_v6 = vld [vmem:[%s5057_s0 + $0x148] sm:$0x7f]  ;;  %v97_v7 = vld [vmem:[%s5057_s0 + $0x138] sm:$0x7f]  ;;  %v96_v9 = vld [vmem:[%s5057_s0 + $0x130] sm:$0xff]  ;;  %v3262_v26 = vmov 2  }
  0x26   :  { %487 = vmatprep.subr.mxu0 %v71_v30  ;;  %521 = vmatprep.mubr.f32.mxu0 %v5067_v11  ;;  %v95_v8 = vld [vmem:[%s5057_s0 + $0x128] sm:$0xff]  ;;  %v94_v10 = vld [vmem:[%s5057_s0 + $0x120] sm:$0xff]  ;;  %v104_v16 = vld [vmem:[%s5057_s0 + $0x170] sm:$0x7f]  ;;  %v5069_v30 = vmov 5  }
  0x27   :  { %488 = vmatpush1.msra.mxu0 %v70_v31  ;;  %3120 = vmatprep.mubr.msk.f32.mxu1 %vm106_vm1, %v46_v32  ;;  %v54_v12 = vld [vmem:[%s5059_s2 + $0x60] sm:$0xff]  ;;  %v55_v15 = vld [vmem:[%s5059_s2 + $0x68] sm:$0xff]  ;;  %v101_v18 = vld [vmem:[%s5057_s0 + $0x158] sm:$0xff] }
  0x28   :  { %3011 = vmatmul.mubr.msk.f32.vlgmr.msra.gmra.mxu0 %vm106_vm1, %v46_v32  ;;  %3121 = vmatmul.mubr.msk.f32.vlgmr.msra.gmra.mxu1 %vm106_vm1, %v47_v33  ;;  %v103_v17 = vld [vmem:[%s5057_s0 + $0x168] sm:$0x7f]  ;;  %v100_v19 = vld [vmem:[%s5057_s0 + $0x150] sm:$0xff]  ;;  %v105_v23 = vld [vmem:[%s5057_s0 + $0x178] sm:$0x7f] }
  0x29   :  { %3016 = vmatprep.subr.msk.mxu1 %vm113_vm0, %v80_v34  ;;  %1507 = vperm.xlu1 %3205, %v3468_v35   ;;  %v56_v20 = vld [vmem:[%s5059_s2 + $0x70] sm:$0xff]  ;;  %v102_v24 = vld [vmem:[%s5057_s0 + $0x160] sm:$0xff]  ;;  %v57_v25 = vld [vmem:[%s5059_s2 + $0x78] sm:$0xff]  ;;  %s3266_s0 = smov 1   ;;  %s3267_s2 = smov 127  }
  0x2a   :  { %1502 = vperm.xlu0 %3204, %v3474_v36   ;;  %3017 = vmatpush1.msk.msra.mxu1 %vm113_vm0, %v79_v37 }
  0x2b   :  { %654 = vmatprep.subr.mxu1 %v77_v38  ;;  %527 = vmatprep.mubr.f32.mxu0 %v5067_v11 }
  0x2c   :  { %655 = vmatpush1.msra.mxu1 %v76_v39  ;;  %688 = vmatprep.mubr.f32.mxu1 %v5067_v11 }
  0x2d   :  { %3012 = vmatmul.mubr.msk.f32.gmra.mxu0 %vm106_vm1, %v47_v33  ;;  %3018 = vmatmul.mubr.msk.f32.vlgmr.msra.gmra.mxu1 %vm106_vm1, %v48_v40 }
  0x2e   :  { %3123 = vmatprep.subr.msk.mxu0 %vm113_vm0, %v81_v41  ;;  %3130 = vmatprep.subr.msk.mxu1 %vm113_vm0, %v87_v42 }
  0x2f   :  { %1517 = vperm.xlu1 %3205, %v3505_v43   ;;  %1512 = vperm.xlu0 %3204, %v3510_v44  }
  0x30   :  { %3124 = vmatpush3.msk.msra.mxu0 %vm113_vm0, %v81_v41  ;;  %3131 = vmatpush3.msk.msra.mxu1 %vm113_vm0, %v87_v42 }
  0x31   :  { %3125 = vmatprep.subr.mxu0 %v78_v45  ;;  %694 = vmatprep.mubr.f32.mxu1 %v5067_v11 }
  0x32   :  { %3126 = vmatpush3.msra.mxu0 %v78_v45  ;;  %3127 = vmatprep.mubr.msk.f32.mxu0 %vm106_vm1, %v48_v40 }
  0x33   :  { %3019 = vmatmul.mubr.msk.f32.gmra.mxu1 %vm106_vm1, %v49_v46  ;;  %3128 = vmatmul.mubr.msk.f32.vlgmr.msra.gmra.mxu0 %vm106_vm1, %v49_v46 }
  0x34   :  { %3023 = vmatprep.subr.msk.mxu0 %vm113_vm0, %v86_v47  ;;  %3132 = vmatprep.subr.mxu1 %v84_v48 }
  0x35   :  { %1527 = vperm.xlu1 %3205, %v3537_v49   ;;  %1522 = vperm.xlu0 %3204, %v3542_v50  }
  0x36   :  { %3024 = vmatpush1.msk.msra.mxu0 %vm113_vm0, %v85_v51  ;;  %3133 = vmatpush3.msra.mxu1 %v84_v48 }
  0x37   :  { %821 = vmatprep.subr.mxu0 %v83_v52  ;;  %855 = vmatprep.mubr.f32.mxu0 %v5067_v11 }
  0x38   :  { %822 = vmatpush1.msra.mxu0 %v82_v53  ;;  %3134 = vmatprep.mubr.msk.f32.mxu1 %vm106_vm1, %v50_v54 }
  0x39   :  { %3025 = vmatmul.mubr.msk.f32.vlgmr.msra.gmra.mxu0 %vm106_vm1, %v50_v54  ;;  %3135 = vmatmul.mubr.msk.f32.vlgmr.msra.gmra.mxu1 %vm106_vm1, %v51_v55 }
  0x3a   :  { %3030 = vmatprep.subr.msk.mxu1 %vm113_vm0, %v92_v56  ;;  %1537 = vperm.xlu1 %3205, %v3572_v57  }
  0x3b   :  { %1532 = vperm.xlu0 %3204, %v3578_v58   ;;  %3031 = vmatpush1.msk.msra.mxu1 %vm113_vm0, %v91_v59 }
  0x3c   :  { %988 = vmatprep.subr.mxu1 %v89_v60  ;;  %861 = vmatprep.mubr.f32.mxu0 %v5067_v11 }
  0x3d   :  { %989 = vmatpush1.msra.mxu1 %v88_v61  ;;  %1022 = vmatprep.mubr.f32.mxu1 %v5067_v11 }
  0x3e   :  { %3026 = vmatmul.mubr.msk.f32.gmra.mxu0 %vm106_vm1, %v51_v55  ;;  %3032 = vmatmul.mubr.msk.f32.vlgmr.msra.gmra.mxu1 %vm106_vm1, %v52_v62 }
  0x3f   :  { %3137 = vmatprep.subr.msk.mxu0 %vm113_vm0, %v93_v63  ;;  %3207 = vset.pattern.permute.xlu1 %v3261_v0 }
  0x40   :  { %3206 = vset.pattern.permute.xlu0 %v3261_v0  ;;  %3138 = vmatpush3.msk.msra.mxu0 %vm113_vm0, %v93_v63 }
  0x41   :  { %1641 = vperm.xlu1 %3207, %v3370_v14   ;;  %1637 = vperm.xlu0 %3206, %v3331_v4  }
  0x42   :  { %3139 = vmatprep.subr.mxu0 %v90_v1  ;;  %1028 = vmatprep.mubr.f32.mxu1 %v5067_v11 }
  0x43   :  { %3140 = vmatpush3.msra.mxu0 %v90_v1  ;;  %3141 = vmatprep.mubr.msk.f32.mxu0 %vm106_vm1, %v52_v62 }
  0x44   :  { %3033 = vmatmul.mubr.msk.f32.gmra.mxu1 %vm106_vm1, %v53_v2  ;;  %3142 = vmatmul.mubr.msk.f32.vlgmr.msra.gmra.mxu0 %vm106_vm1, %v53_v2 }
  0x45   :  { %3037 = vmatprep.subr.msk.mxu0 %vm113_vm0, %v98_v5  ;;  %3144 = vmatprep.subr.msk.mxu1 %vm113_vm0, %v99_v6 }
  0x46   :  { %3038 = vmatpush1.msk.msra.mxu0 %vm113_vm0, %v97_v7  ;;  %3145 = vmatpush3.msk.msra.mxu1 %vm113_vm0, %v99_v6 }
  0x47   :  { %1645 = vperm.xlu1 %3207, %v3326_v3   ;;  %1649 = vperm.xlu0 %3206, %v3364_v13  }
  0x48   :  { %1155 = vmatprep.subr.mxu0 %v95_v8  ;;  %3146 = vmatprep.subr.mxu1 %v96_v9 }
  0x49   :  { %1156 = vmatpush1.msra.mxu0 %v94_v10  ;;  %1189 = vmatprep.mubr.f32.mxu0 %v5067_v11 }
  0x4a   :  { %3147 = vmatpush3.msra.mxu1 %v96_v9  ;;  %3148 = vmatprep.mubr.msk.f32.mxu1 %vm106_vm1, %v54_v12 }
  0x4b   :  { %3039 = vmatmul.mubr.msk.f32.vlgmr.msra.gmra.mxu0 %vm106_vm1, %v54_v12  ;;  %3149 = vmatmul.mubr.msk.f32.vlgmr.msra.gmra.mxu1 %vm106_vm1, %v55_v15 }
  0x4c   :  { %3044 = vmatprep.subr.msk.mxu1 %vm113_vm0, %v104_v16  ;;  %1653 = vperm.xlu1 %3207, %v3406_v22  }
  0x4d   :  { %3045 = vmatpush1.msk.msra.mxu1 %vm113_vm0, %v103_v17  ;;  %1657 = vperm.xlu0 %3206, %v3401_v21  }
  0x4e   :  { %1322 = vmatprep.subr.mxu1 %v101_v18  ;;  %1195 = vmatprep.mubr.f32.mxu0 %v5067_v11 }
  0x4f   :  { %1323 = vmatpush1.msra.mxu1 %v100_v19  ;;  %1356 = vmatprep.mubr.f32.mxu1 %v5067_v11 }
  0x50   :  { %3040 = vmatmul.mubr.msk.f32.gmra.mxu0 %vm106_vm1, %v55_v15  ;;  %3046 = vmatmul.mubr.msk.f32.vlgmr.msra.gmra.mxu1 %vm106_vm1, %v56_v20 }
  0x51   :  { %3151 = vmatprep.subr.msk.mxu0 %vm113_vm0, %v105_v23  ;;  %1661 = vperm.xlu1 %3207, %v3438_v28  }
  0x52   :  { %3152 = vmatpush3.msk.msra.mxu0 %vm113_vm0, %v105_v23  ;;  %1665 = vperm.xlu0 %3206, %v3433_v27  }
  0x53   :  { %3153 = vmatprep.subr.mxu0 %v102_v24  ;;  %1362 = vmatprep.mubr.f32.mxu1 %v5067_v11 }
  0x54   :  { %3154 = vmatpush3.msra.mxu0 %v102_v24  ;;  %3155 = vmatprep.mubr.msk.f32.mxu0 %vm106_vm1, %v56_v20 }
  0x55   :  { %3047 = vmatmul.mubr.msk.f32.gmra.mxu1 %vm106_vm1, %v57_v25  ;;  %3156 = vmatmul.mubr.msk.f32.vlgmr.msra.gmra.mxu0 %vm106_vm1, %v57_v25 }
  0x56   :  { %1669 = vperm.xlu1 %3207, %v3474_v36   ;;  %1673 = vperm.xlu0 %3206, %v3468_v35  }
  0x57   :  { %3158 = vmatprep.subr.mxu0 %v5067_v11  ;;  %2854 = vmatprep.mubr.f32.mxu1 %v5067_v11 }
  0x5a   :  { %1677 = vperm.xlu1 %3207, %v3510_v44   ;;  %1681 = vperm.xlu0 %3206, %v3505_v43  }
  0x5e   :  { %1685 = vperm.xlu1 %3207, %v3542_v50   ;;  %1689 = vperm.xlu0 %3206, %v3537_v49  }
  0x62   :  { %1693 = vperm.xlu1 %3207, %v3578_v58   ;;  %1697 = vperm.xlu0 %3206, %v3572_v57  }
  0x66   :  { %3208 = vset.pattern.permute.xlu1 %v3262_v26  ;;  %3209 = vset.pattern.permute.xlu0 %v3262_v26 }
  0x67   :  { %1749 = vperm.xlu1 %3208, %v3331_v4   ;;  %1753 = vperm.xlu0 %3209, %v3370_v14   ;;  %v3264_v4 = vmov 3  }
  0x6b   :  { %1757 = vperm.xlu1 %3208, %v3326_v3   ;;  %1765 = vperm.xlu0 %3209, %v3406_v22   ;;  %v5071_v3 = vmov 4  }
  0x6f   :  { %1761 = vperm.xlu1 %3208, %v3364_v13   ;;  %1773 = vperm.xlu0 %3209, %v3438_v28  }
  0x73   :  { %1769 = vperm.xlu1 %3208, %v3401_v21   ;;  %1805 = vperm.xlu0 %3209, %v3578_v58  }
  0x77   :  { %1809 = vperm.xlu1 %3208, %v3572_v57   ;;  %1797 = vperm.xlu0 %3209, %v3542_v50  }
  0x7b   :  { %1801 = vperm.xlu1 %3208, %v3537_v49   ;;  %1789 = vperm.xlu0 %3209, %v3510_v44  }
  0x7f   :  { %1793 = vperm.xlu1 %3208, %v3505_v43   ;;  %1781 = vperm.xlu0 %3209, %v3474_v36  }
  0x83   :  { %1785 = vperm.xlu1 %3208, %v3468_v35   ;;  %3211 = vset.pattern.permute.xlu0 %v5071_v3 }
  0x84   :  { %2528 = vperm.xlu0 %3211, %v3572_v57  }
  0x87   :  { %1777 = vperm.xlu1 %3208, %v3433_v27  }
  0x88   :  { %2512 = vperm.xlu0 %3211, %v3505_v43  }
  0x8b   :  { %3210 = vset.pattern.permute.xlu1 %v3264_v4 }
  0x8c   :  { %2416 = vperm.xlu1 %3210, %v3572_v57   ;;  %2508 = vperm.xlu0 %3211, %v3510_v44  }
  0x8d   :  { %v3724_v13 = vpop.permute.xlu1 %1472  ;;  %v3726_v14 = vpop.permute.xlu0 %1462 }
  0x90   :  { %2412 = vperm.xlu1 %3210, %v3578_v58   ;;  %3218 = vset.pattern.permute.xlu0 %v3264_v4 }
  0x91   :  { %2408 = vperm.xlu0 %3218, %v3537_v49  }
  0x93   :  { %v3730_v21 = vpop.permute.xlu1 %1477 }
  0x94   :  { %3212 = vset.pattern.permute.xlu1 %v5071_v3  ;;  %v3733_v22 = vpop.permute.xlu0 %1467 }
  0x95   :  { %2524 = vperm.xlu1 %3212, %v3578_v58   ;;  %2404 = vperm.xlu0 %3218, %v3542_v50  }
  0x99   :  { %2520 = vperm.xlu1 %3212, %v3537_v49   ;;  %v3738_v28 = vpop.permute.xlu1 %1487  ;;  %v3740_v29 = vpop.permute.xlu0 %1482  ;;  %2392 = vperm.xlu0 %3218, %v3468_v35  }
  0x9d   :  { %3213 = vset.pattern.permute.xlu1 %v5069_v30  ;;  %2388 = vperm.xlu0 %3218, %v3474_v36  }
  0x9e   :  { %2684 = vperm.xlu1 %3213, %v3578_v58  }
  0x9f   :  { %v3746_v31 = vpop.permute.xlu1 %1497  ;;  %v3748_v32 = vpop.permute.xlu0 %1492 }
  0xa1   :  { %2384 = vperm.xlu0 %3218, %v3433_v27  }
  0xa2   :  { %3214 = vset.pattern.permute.xlu1 %v5071_v3 }
  0xa3   :  { %2516 = vperm.xlu1 %3214, %v3542_v50  }
  0xa4   :  { %v3753_v33 = vpop.permute.xlu1 %1507 }
  0xa5   :  { %v3755_v34 = vpop.permute.xlu0 %1502 }
  0xa7   :  { %3215 = vset.pattern.permute.xlu1 %v3264_v4 }
  0xa8   :  { %2400 = vperm.xlu1 %3215, %v3505_v43  }
  0xaa   :  { %v3758_v37 = vpop.permute.xlu1 %1517  ;;  %v3760_v38 = vpop.permute.xlu0 %1512 }
  0xac   :  { %3216 = vset.pattern.permute.xlu1 %v5069_v30 }
  0xad   :  { %2676 = vperm.xlu1 %3216, %v3542_v50  }
  0xb0   :  { %v3764_v39 = vpop.permute.xlu1 %1527  ;;  %v3766_v40 = vpop.permute.xlu0 %1522 }
  0xb1   :  { %3217 = vset.pattern.permute.xlu1 %v3264_v4 }
  0xb2   :  { %2396 = vperm.xlu1 %3217, %v3510_v44  }
  0xb5   :  { %v3770_v41 = vpop.permute.xlu1 %1537 }
  0xb6   :  { %3219 = vset.pattern.permute.xlu1 %v5069_v30  ;;  %v3772_v42 = vpop.permute.xlu0 %1532 }
  0xb7   :  { %2672 = vperm.xlu1 %3219, %v3505_v43  }
  0xbb   :  { %3220 = vset.pattern.permute.xlu1 %v5071_v3 }
  0xbc   :  { %2504 = vperm.xlu1 %3220, %v3468_v35   ;;  %v3777_v45 = vpop.permute.xlu1 %1641  ;;  %v1638_v46 = vpop.permute.xlu0 %1637 }
  0xc0   :  { %3221 = vset.pattern.permute.xlu1 %v5069_v30 }
  0xc1   :  { %2668 = vperm.xlu1 %3221, %v3510_v44  }
  0xc2   :  { %v3781_v47 = vpop.permute.xlu1 %1645  ;;  %v3783_v48 = vpop.permute.xlu0 %1649 }
  0xc5   :  { %3222 = vset.pattern.permute.xlu1 %v5071_v3 }
  0xc6   :  { %2500 = vperm.xlu1 %3222, %v3474_v36   ;;  %v5066_v36 = vlaneseq }
  0xc7   :  { %v3787_v43 = vpop.permute.xlu1 %1653 }
  0xc8   :  { %v3789_v49 = vpop.permute.xlu0 %1657  ;;  %v1861_v59 = vand.u32 127, %v5066_v36 }
  0xca   :  { %2496 = vperm.xlu1 %3222, %v3433_v27   ;;  %v1863_v12 = vadd.s32 256, %v1861_v59 }
  0xcc   :  { %v3792_v35 = vpop.permute.xlu1 %1661  ;;  %vm1866_vm2 = vcmp.lt.s32.totalorder %v1863_v12, 377 }
  0xcd   :  { %v3794_v50 = vpop.permute.xlu0 %1665 }
  0xce   :  { %3223 = vset.pattern.permute.xlu1 %v5069_v30 }
  0xd1   :  { %v3797_v44 = vpop.permute.xlu1 %1669  ;;  %v3799_v51 = vpop.permute.xlu0 %1673 }
  0xd5   :  { %v3801_v52 = vpop.permute.xlu1 %1677  ;;  %v3803_v53 = vpop.permute.xlu0 %1681 }
  0xd7   :  { %v189_v54 = vpop.f32.mrf.mxu0  ;;  %v3108_v55 = vpop.f32.mrf.mxu1 }
  0xd8   :  { %v1540_v56 = vadd.f32 %v3726_v14, %v189_v54  ;;  %v1545_v27 = vadd.f32 %v3108_v55, %v3733_v22 }
  0xd9   :  { %v3807_v57 = vpop.permute.xlu1 %1685  ;;  %v3809_v58 = vpop.permute.xlu0 %1689 }
  0xda   :  { %v191_v60 = vpop.f32.mrf.mxu0  ;;  %v266_v61 = vpop.f32.mrf.mxu1  ;;  %v1588_v62 = vmax.f32 %v1540_v56, 0.0  ;;  %v1593_v63 = vmax.f32 %v1545_v27, 0.0 }
  0xdb   :  { %v1541_v0 = vadd.f32 %v3726_v14, %v191_v60  ;;  %v1542_v1 = vadd.f32 %v3726_v14, %v266_v61 }
  0xdc   :  { %v195_v2 = vpop.f32.mrf.mxu0  ;;  %v356_v5 = vpop.f32.mrf.mxu1  ;;  %v1700_v17 = vmul.f32 %v1638_v46, %v1588_v62  ;;  %v1705_v18 = vmul.f32 %v3777_v45, %v1593_v63  ;;  %v3829_v62 = vsel %vm1866_vm2, 1.0, %v5067_v11 }
  0xdd   :  { %v3814_v6 = vpop.permute.xlu1 %1693  ;;  %v3816_v7 = vpop.permute.xlu0 %1697  ;;  %v1589_v8 = vmax.f32 %v1541_v0, 0.0  ;;  %v1590_v9 = vmax.f32 %v1542_v1, 0.0  ;;  %v1543_v10 = vadd.f32 %v3733_v22, %v195_v2  ;;  %v1546_v15 = vadd.f32 %v3724_v13, %v356_v5 }
  0xde   :  { %v197_v16 = vpop.f32.mrf.mxu0  ;;  %v358_v23 = vpop.f32.mrf.mxu1 }
  0xdf   :  { %v1701_v19 = vmul.f32 %v1638_v46, %v1589_v8  ;;  %v1702_v20 = vmul.f32 %v1638_v46, %v1590_v9  ;;  %v1591_v24 = vmax.f32 %v1543_v10, 0.0  ;;  %v1544_v25 = vadd.f32 %v3733_v22, %v197_v16 }
  0xe0   :  { %v1594_v14 = vmax.f32 %v1546_v15, 0.0  ;;  %v1547_v54 = vadd.f32 %v3724_v13, %v358_v23 }
  0xe1   :  { %v1703_v22 = vmul.f32 %v3777_v45, %v1591_v24  ;;  %v1592_v63 = vmax.f32 %v1544_v25, 0.0 }
  0xe2   :  { %v1750_v26 = vpop.permute.xlu1 %1749  ;;  %v1754_v4 = vpop.permute.xlu0 %1753  ;;  %v1706_v9 = vmul.f32 %v3781_v47, %v1594_v14  ;;  %v1595_v10 = vmax.f32 %v1547_v54, 0.0 }
  0xe3   :  { %v1817_v55 = vadd.f32 %v1754_v4, %v1705_v18  ;;  %v1814_v56 = vadd.f32 %v1750_v26, %v1702_v20  ;;  %v362_v27 = vpop.f32.mrf.mxu1  ;;  %v3115_v59 = vpop.f32.mrf.mxu0  ;;  %v3823_v60 = vadd.f32 %v1750_v26, %v1700_v17  ;;  %v3825_v61 = vadd.f32 %v1750_v26, %v1701_v19 }
  0xe4   :  { %v1551_v46 = vadd.f32 %v3115_v59, %v3730_v21  ;;  %v1549_v12 = vadd.f32 %v3730_v21, %v362_v27  ;;  %v1704_v24 = vmul.f32 %v3777_v45, %v1592_v63  ;;  %v1707_v26 = vmul.f32 %v3781_v47, %v1595_v10 }
  0xe5   :  { %5162 = vst [vmem:[#allocation5_spill] sm:$0xff] %v3823_v60  ;;  %5163 = vst [vmem:[#allocation6_spill] sm:$0xff] %v3825_v61  ;;  %1969 = vrot.lane.b32.xlu0 %v3823_v60, %s3266_s0  ;;  %v364_v0 = vpop.f32.mrf.mxu1  ;;  %v433_v1 = vpop.f32.mrf.mxu0  ;;  %1971 = vrot.lane.b32.xlu1 %v3825_v61, %s3266_s0  ;;  %v3837_v2 = vmul.f32 %v3829_v62, %v1814_v56  ;;  %v3846_v18 = vmul.f32 %v3829_v62, %v1817_v55 }
  0xe6   :  { %v1758_v5 = vpop.permute.xlu1 %1757  ;;  %v3839_v8 = vpop.permute.xlu0 %1765  ;;  %v1599_v15 = vmax.f32 %v1551_v46, 0.0  ;;  %v1550_v16 = vadd.f32 %v3730_v21, %v364_v0  ;;  %v1548_v17 = vadd.f32 %v3724_v13, %v433_v1  ;;  %v1597_v14 = vmax.f32 %v1549_v12, 0.0 }
  0xe7   :  { %5164 = vst [vmem:[#allocation7_spill] sm:$0xff] %v3837_v2  ;;  %5165 = vst [vmem:[#allocation8_spill] sm:$0xff] %v3839_v8  ;;  %v3860_v54 = vadd.f32 %v1758_v5, %v1706_v9  ;;  %v3862_v55 = vadd.f32 %v1754_v4, %v1703_v22 }
  0xe8   :  { %5166 = vst [vmem:[#allocation9_spill] sm:$0xff] %v3846_v18  ;;  %v1711_v19 = vmul.f32 %v3783_v48, %v1599_v15  ;;  %v3849_v20 = vpop.f32.mrf.mxu0  ;;  %v3122_v23 = vpop.f32.mrf.mxu1  ;;  %v1598_v45 = vmax.f32 %v1550_v16, 0.0  ;;  %v1596_v27 = vmax.f32 %v1548_v17, 0.0  ;;  %v3881_v16 = vadd.f32 %v1754_v4, %v1704_v24 }
  0xe9   :  { %v1557_v25 = vadd.f32 %v3122_v23, %v3738_v28  ;;  %1973 = vrot.lane.b32.xlu0 %v3837_v2, %s3266_s0  ;;  %1979 = vrot.lane.b32.xlu1 %v3846_v18, %s3266_s0  ;;  %5167 = vst [vmem:[#allocation10_spill] sm:$0xff] %v3860_v54  ;;  %5168 = vst [vmem:[#allocation11_spill] sm:$0xff] %v3862_v55  ;;  %v3883_v17 = vadd.f32 %v1758_v5, %v1707_v26 }
  0xea   :  { %v1762_v21 = vpop.permute.xlu1 %1761  ;;  %v3857_v13 = vpop.permute.xlu0 %1773  ;;  %5171 = vst [vmem:[#allocation14_spill] sm:$0xff] %v3881_v16  ;;  %v1710_v23 = vmul.f32 %v3783_v48, %v1598_v45 }
  0xeb   :  { %v1823_v56 = vadd.f32 %v1762_v21, %v1711_v19  ;;  %v1605_v59 = vmax.f32 %v1557_v25, 0.0  ;;  %v3864_v46 = vpop.f32.mrf.mxu0  ;;  %v600_v63 = vpop.f32.mrf.mxu1  ;;  %5172 = vst [vmem:[#allocation15_spill] sm:$0xff] %v3883_v17  ;;  %v1709_v19 = vmul.f32 %v3783_v48, %v1597_v14  ;;  %v1708_v25 = vmul.f32 %v3781_v47, %v1596_v27 }
  0xec   :  { %5169 = vst [vmem:[#allocation12_spill] sm:$0xff] %v3864_v46  ;;  %v1554_v0 = vadd.f32 %v3740_v29, %v600_v63  ;;  %v3908_v45 = vadd.f32 %v1762_v21, %v1710_v23 }
  0xed   :  { %v3868_v1 = vmul.f32 %v3829_v62, %v1823_v56  ;;  %v1717_v15 = vmul.f32 %v3789_v49, %v1605_v59  ;;  %v3871_v10 = vpop.f32.mrf.mxu0  ;;  %v3873_v9 = vpop.f32.mrf.mxu1  ;;  %1981 = vrot.lane.b32.xlu0 %v3860_v54, %s3266_s0  ;;  %1975 = vrot.lane.b32.xlu1 %v3862_v55, %s3266_s0  ;;  %v1820_v24 = vadd.f32 %v1758_v5, %v1708_v25 }
  0xee   :  { %v3879_v22 = vpop.permute.xlu1 %1769  ;;  %v1602_v12 = vmax.f32 %v1554_v0, 0.0  ;;  %v3893_v36 = vpop.permute.xlu0 %1805  ;;  %5174 = vst [vmem:[#allocation17_spill] sm:$0xff] %v3908_v45  ;;  %v3910_v27 = vadd.f32 %v1762_v21, %v1709_v19 }
  0xef   :  { %5170 = vst [vmem:[#allocation13_spill] sm:$0xff] %v3868_v1  ;;  %v1829_v56 = vadd.f32 %v3879_v22, %v1717_v15  ;;  %v3889_v59 = vpop.f32.mrf.mxu0  ;;  %v3891_v63 = vpop.f32.mrf.mxu1  ;;  %v3928_v19 = vmul.f32 %v3829_v62, %v1820_v24 }
  0xf0   :  { %v1714_v0 = vmul.f32 %v3787_v43, %v1602_v12  ;;  %5175 = vst [vmem:[#allocation18_spill] sm:$0xff] %v3910_v27 }
  0xf1   :  { %v3897_v4 = vmul.f32 %v3829_v62, %v1829_v56  ;;  %1977 = vrot.lane.b32.xlu0 %v3881_v16, %s3266_s0  ;;  %1983 = vrot.lane.b32.xlu1 %v3883_v17, %s3266_s0  ;;  %5177 = vst [vmem:[#allocation20_spill] sm:$0xff] %v3928_v19 }
  0xf2   :  { %v3903_v47 = vpop.permute.xlu1 %1809  ;;  %v1826_v48 = vadd.f32 %v3839_v8, %v1714_v0  ;;  %v3921_v5 = vpop.permute.xlu0 %1797 }
  0xf3   :  { %5173 = vst [vmem:[#allocation16_spill] sm:$0xff] %v3897_v4  ;;  %v3906_v26 = vpop.f32.mrf.mxu1  ;;  %v3129_v14 = vpop.f32.mrf.mxu0 }
  0xf4   :  { %v3913_v15 = vmul.f32 %v3829_v62, %v1826_v48  ;;  %v1563_v21 = vadd.f32 %v3129_v14, %v3746_v31 }
  0xf5   :  { %v3915_v12 = vpop.f32.mrf.mxu1  ;;  %v767_v56 = vpop.f32.mrf.mxu0  ;;  %1989 = vrot.lane.b32.xlu0 %v3908_v45, %s3266_s0  ;;  %1987 = vrot.lane.b32.xlu1 %v3910_v27, %s3266_s0 }
  0xf6   :  { %5176 = vst [vmem:[#allocation19_spill] sm:$0xff] %v3913_v15  ;;  %v3923_v25 = vpop.permute.xlu1 %1801  ;;  %v1560_v23 = vadd.f32 %v3748_v32, %v767_v56  ;;  %v1611_v55 = vmax.f32 %v1563_v21, 0.0  ;;  %v3940_v16 = vpop.permute.xlu0 %1789 }
  0xf8   :  { %v1608_v0 = vmax.f32 %v1560_v23, 0.0 }
  0xf9   :  { %v3930_v48 = vpop.f32.mrf.mxu0  ;;  %v3136_v11 = vpop.f32.mrf.mxu1  ;;  %1985 = vrot.lane.b32.xlu0 %v3928_v19, %s3266_s0 }
  0xfa   :  { %v3934_v30 = vpop.permute.xlu1 %1793  ;;  %v1720_v3 = vmul.f32 %v3792_v35, %v1608_v0  ;;  %v1569_v2 = vadd.f32 %v3136_v11, %v3753_v33  ;;  %v1723_v11 = vmul.f32 %v3794_v50, %v1611_v55 }
  0xfb   :  { %v3938_v56 = vpop.f32.mrf.mxu0  ;;  %v934_v14 = vpop.f32.mrf.mxu1 }
  0xfc   :  { %v1832_v24 = vadd.f32 %v3857_v13, %v1720_v3  ;;  %v1617_v23 = vmax.f32 %v1569_v2, 0.0  ;;  %v1566_v27 = vadd.f32 %v3755_v34, %v934_v14 }
  0xfe   :  { %v1786_v1 = vpop.permute.xlu1 %1785  ;;  %v3945_v19 = vmul.f32 %v3829_v62, %v1832_v24  ;;  %v1729_v60 = vmul.f32 %v3799_v51, %v1617_v23  ;;  %v863_v0 = vpop.f32.mrf.mxu0  ;;  %v1614_v21 = vmax.f32 %v1566_v27, 0.0 }
  0xff   :  { %v1567_v61 = vadd.f32 %v3753_v33, %v863_v0  ;;  %v1024_v18 = vpop.f32.mrf.mxu1  ;;  %v3953_v24 = vpop.permute.xlu0 %1781 }
 0x100   :  { %5178 = vst [vmem:[#allocation21_spill] sm:$0xff] %v3945_v19  ;;  %v1841_v15 = vadd.f32 %v1786_v1, %v1729_v60  ;;  %v1570_v54 = vadd.f32 %v3760_v38, %v1024_v18  ;;  %v865_v3 = vpop.f32.mrf.mxu0  ;;  %v1726_v2 = vmul.f32 %v3797_v44, %v1614_v21 }
 0x101   :  { %v1568_v14 = vadd.f32 %v3753_v33, %v865_v3  ;;  %v1026_v17 = vpop.f32.mrf.mxu1  ;;  %v1615_v55 = vmax.f32 %v1567_v61, 0.0 }
 0x102   :  { %v3956_v23 = vmul.f32 %v3829_v62, %v1841_v15  ;;  %v3958_v19 = vpop.permute.xlu1 %1777  ;;  %v1618_v27 = vmax.f32 %v1570_v54, 0.0  ;;  %v1571_v0 = vadd.f32 %v3760_v38, %v1026_v17  ;;  %v1838_v18 = vadd.f32 %v3953_v24, %v1726_v2 }
 0x103   :  { %v1835_v60 = vadd.f32 %v3958_v19, %v1723_v11  ;;  %v1616_v45 = vmax.f32 %v1568_v14, 0.0  ;;  %v1727_v54 = vmul.f32 %v3799_v51, %v1615_v55 }
 0x104   :  { %v1730_v21 = vmul.f32 %v3801_v52, %v1618_v27  ;;  %v1619_v33 = vmax.f32 %v1571_v0, 0.0  ;;  %v1030_v3 = vpop.f32.mrf.mxu1  ;;  %v3143_v4 = vpop.f32.mrf.mxu0  ;;  %v3968_v15 = vmul.f32 %v3829_v62, %v1838_v18 }
 0x105   :  { %v3965_v46 = vmul.f32 %v3829_v62, %v1835_v60  ;;  %v1573_v61 = vadd.f32 %v3758_v37, %v1030_v3  ;;  %v1575_v14 = vadd.f32 %v3143_v4, %v3758_v37  ;;  %v1728_v0 = vmul.f32 %v3799_v51, %v1616_v45 }
 0x106   :  { %v1731_v17 = vmul.f32 %v3801_v52, %v1619_v33  ;;  %v1032_v11 = vpop.f32.mrf.mxu1  ;;  %v3974_v2 = vadd.f32 %v3940_v16, %v1730_v21  ;;  %v1101_v27 = vpop.f32.mrf.mxu0  ;;  %v3986_v55 = vadd.f32 %v1786_v1, %v1727_v54 }
 0x107   :  { %5179 = vst [vmem:[#allocation22_spill] sm:$0xff] %v3965_v46  ;;  %v1621_v60 = vmax.f32 %v1573_v61, 0.0  ;;  %v1574_v8 = vadd.f32 %v3758_v37, %v1032_v11  ;;  %v1623_v3 = vmax.f32 %v1575_v14, 0.0  ;;  %v3991_v37 = vadd.f32 %v1786_v1, %v1728_v0  ;;  %v4005_v1 = vpop.permute.xlu1 %2416 }
 0x108   :  { %5180 = vst [vmem:[#allocation23_spill] sm:$0xff] %v3974_v2  ;;  %2029 = vrot.lane.b32.xlu0 %v3974_v2, %s3266_s0  ;;  %v3982_v18 = vadd.f32 %v3940_v16, %v1731_v17  ;;  %5182 = vst [vmem:[#allocation25_spill] sm:$0xff] %v3986_v55 }
 0x109   :  { %v1733_v4 = vmul.f32 %v3803_v53, %v1621_v60  ;;  %v1622_v51 = vmax.f32 %v1574_v8, 0.0  ;;  %5183 = vst [vmem:[#allocation26_spill] sm:$0xff] %v3991_v37  ;;  %v1735_v54 = vmul.f32 %v3803_v53, %v1623_v3  ;;  %5184 = vst [vmem:[#allocation27_spill] sm:$0xff] %v4005_v1 }
 0x10a   :  { %5181 = vst [vmem:[#allocation24_spill] sm:$0xff] %v3982_v18  ;;  %2031 = vrot.lane.b32.xlu1 %v3982_v18, %s3266_s0 }
 0x10b   :  { %v1191_v21 = vpop.f32.mrf.mxu0  ;;  %v3150_v33 = vpop.f32.mrf.mxu1  ;;  %v1734_v11 = vmul.f32 %v3803_v53, %v1622_v51  ;;  %v4003_v8 = vadd.f32 %v3934_v30, %v1733_v4  ;;  %v1572_v53 = vadd.f32 %v3760_v38, %v1101_v27 }
 0x10c   :  { %2023 = vrot.lane.b32.xlu0 %v3986_v55, %s3266_s0  ;;  %v1581_v61 = vadd.f32 %v3150_v33, %v3764_v39  ;;  %v1576_v14 = vadd.f32 %v3766_v40, %v1191_v21  ;;  %v1847_v33 = vadd.f32 %v3934_v30, %v1735_v54  ;;  %v4021_v54 = vpop.permute.xlu1 %2412 }
 0x10d   :  { %v1193_v45 = vpop.f32.mrf.mxu0  ;;  %v4014_v21 = vadd.f32 %v3934_v30, %v1734_v11  ;;  %5185 = vst [vmem:[#allocation28_spill] sm:$0xff] %v4021_v54 }
 0x10e   :  { %v1577_v17 = vadd.f32 %v3766_v40, %v1193_v45  ;;  %2025 = vrot.lane.b32.xlu1 %v3991_v37, %s3266_s0  ;;  %v1629_v0 = vmax.f32 %v1581_v61, 0.0  ;;  %v1624_v3 = vmax.f32 %v1576_v14, 0.0  ;;  %v1268_v45 = vpop.f32.mrf.mxu1  ;;  %v1620_v61 = vmax.f32 %v1572_v53, 0.0 }
 0x10f   :  { %v4026_v38 = vmul.f32 %v3829_v62, %v1847_v33 }
 0x110   :  { %2224 = vrot.lane.b32.xlu0 %v3982_v18, %s3267_s2  ;;  %v1625_v60 = vmax.f32 %v1577_v17, 0.0  ;;  %v1741_v4 = vmul.f32 %v3809_v58, %v1629_v0  ;;  %v1736_v17 = vmul.f32 %v3807_v57, %v1624_v3  ;;  %v1197_v30 = vpop.f32.mrf.mxu0  ;;  %v1358_v14 = vpop.f32.mrf.mxu1  ;;  %v1732_v0 = vmul.f32 %v3801_v52, %v1620_v61 }
 0x111   :  { %5186 = vst [vmem:[#allocation29_spill] sm:$0xff] %v4026_v38  ;;  %v1579_v53 = vadd.f32 %v3764_v39, %v1197_v30  ;;  %v1582_v33 = vadd.f32 %v3772_v42, %v1358_v14  ;;  %v4042_v3 = vpop.permute.xlu1 %2524  ;;  %v1578_v61 = vadd.f32 %v3766_v40, %v1268_v45 }
 0x112   :  { %2228 = vrot.lane.b32.xlu1 %v4003_v8, %s3267_s2  ;;  %v1737_v51 = vmul.f32 %v3807_v57, %v1625_v60  ;;  %v1853_v27 = vadd.f32 %v3923_v25, %v1741_v4  ;;  %v4036_v60 = vadd.f32 %v3921_v5, %v1736_v17  ;;  %5187 = vst [vmem:[#allocation30_spill] sm:$0xff] %v4042_v3  ;;  %v1199_v14 = vpop.f32.mrf.mxu0 }
 0x113   :  { %v1844_v52 = vadd.f32 %v3940_v16, %v1732_v0  ;;  %v1627_v17 = vmax.f32 %v1579_v53, 0.0  ;;  %v1630_v30 = vmax.f32 %v1582_v33, 0.0  ;;  %v1580_v16 = vadd.f32 %v3764_v39, %v1199_v14  ;;  %v4073_v33 = vpop.permute.xlu0 %2528 }
 0x114   :  { %2035 = vrot.lane.b32.xlu0 %v4003_v8, %s3266_s0  ;;  %v4032_v11 = vadd.f32 %v3921_v5, %v1737_v51  ;;  %v4047_v4 = vmul.f32 %v3829_v62, %v1853_v27  ;;  %v1360_v51 = vpop.f32.mrf.mxu1  ;;  %v1626_v27 = vmax.f32 %v1578_v61, 0.0  ;;  %5190 = vst [vmem:[#allocation33_spill] sm:$0xff] %v4073_v33 }
 0x115   :  { %v4056_v1 = vmul.f32 %v3829_v62, %v1844_v52  ;;  %v1739_v54 = vmul.f32 %v3809_v58, %v1627_v17  ;;  %v4059_v3 = vpop.permute.xlu1 %2520  ;;  %v1742_v40 = vmul.f32 %v3814_v6, %v1630_v30  ;;  %v1628_v52 = vmax.f32 %v1580_v16, 0.0 }
 0x116   :  { %2037 = vrot.lane.b32.xlu1 %v4014_v21, %s3266_s0  ;;  %v1364_v18 = vpop.f32.mrf.mxu1  ;;  %v1738_v0 = vmul.f32 %v3807_v57, %v1626_v27 }
 0x117   :  { %5188 = vst [vmem:[#allocation31_spill] sm:$0xff] %v4056_v1  ;;  %v4069_v53 = vadd.f32 %v3923_v25, %v1739_v54  ;;  %v4081_v39 = vadd.f32 %v3893_v36, %v1742_v40  ;;  %v1583_v54 = vadd.f32 %v3772_v42, %v1360_v51  ;;  %v1740_v30 = vmul.f32 %v3809_v58, %v1628_v52  ;;  %v4090_v27 = vpop.permute.xlu0 %2512 }
 0x118   :  { %2230 = vrot.lane.b32.xlu0 %v4014_v21, %s3267_s2  ;;  %v1366_v45 = vpop.f32.mrf.mxu1  ;;  %v1850_v57 = vadd.f32 %v3921_v5, %v1738_v0  ;;  %v1564_v5 = vadd.f32 %v3755_v34, %v3930_v48 }
 0x119   :  { %5189 = vst [vmem:[#allocation32_spill] sm:$0xff] %v4069_v53  ;;  %v1586_v61 = vadd.f32 %v3770_v41, %v1366_v45  ;;  %v4076_v17 = vpop.permute.xlu1 %2684  ;;  %v1631_v40 = vmax.f32 %v1583_v54, 0.0  ;;  %v4105_v51 = vadd.f32 %v3923_v25, %v1740_v30  ;;  %v3157_v54 = vpop.f32.mrf.mxu0  ;;  %v1585_v30 = vadd.f32 %v3770_v41, %v1364_v18 }
 0x11a   :  { %2232 = vrot.lane.b32.xlu1 %v4026_v38, %s3267_s2  ;;  %5191 = vst [vmem:[#allocation34_spill] sm:$0xff] %v4076_v17  ;;  %v4093_v16 = vmul.f32 %v3829_v62, %v1850_v57  ;;  %v1561_v18 = vadd.f32 %v3746_v31, %v3906_v26  ;;  %v1587_v33 = vadd.f32 %v3157_v54, %v3770_v41 }
 0x11b   :  { %v1634_v14 = vmax.f32 %v1586_v61, 0.0  ;;  %v1743_v0 = vmul.f32 %v3814_v6, %v1631_v40  ;;  %v1612_v61 = vmax.f32 %v1564_v5, 0.0  ;;  %v4112_v57 = vpop.permute.xlu0 %2508 }
 0x11c   :  { %2043 = vrot.lane.b32.xlu0 %v4032_v11, %s3266_s0  ;;  %5192 = vst [vmem:[#allocation35_spill] sm:$0xff] %v4112_v57  ;;  %v1609_v26 = vmax.f32 %v1561_v18, 0.0 }
 0x11d   :  { %v1746_v58 = vmul.f32 %v3816_v7, %v1634_v14  ;;  %v4120_v25 = vadd.f32 %v3893_v36, %v1743_v0  ;;  %v1724_v14 = vmul.f32 %v3797_v44, %v1612_v61 }
 0x11e   :  { %2041 = vrot.lane.b32.xlu1 %v4036_v60, %s3266_s0  ;;  %v4095_v45 = vpop.permute.xlu1 %2516  ;;  %v1721_v41 = vmul.f32 %v3794_v50, %v1609_v26 }
 0x11f   :  { %v4115_v48 = vadd.f32 %v3903_v47, %v1746_v58  ;;  %v4130_v5 = vpop.permute.xlu0 %2408  ;;  %v1435_v58 = vpop.f32.mrf.mxu0  ;;  %v4137_v0 = vadd.f32 %v3953_v24, %v1724_v14  ;;  %v1635_v14 = vmax.f32 %v1587_v33, 0.0  ;;  %v4169_v33 = vld [vmem:[%s5060_s3 + $0x30] sm:$0xff] }
 0x120   :  { %2244 = vrot.lane.b32.xlu0 %v4047_v4, %s3267_s2  ;;  %v1584_v61 = vadd.f32 %v3772_v42, %v1435_v58 }
 0x121   :  { %v1747_v18 = vmul.f32 %v3816_v7, %v1635_v14 }
 0x122   :  { %2234 = vrot.lane.b32.xlu1 %v4036_v60, %s3267_s2 }
 0x123   :  { %v4108_v52 = vpop.permute.xlu1 %2400 }
 0x124   :  { %2236 = vrot.lane.b32.xlu0 %v4032_v11, %s3267_s2 }
 0x126   :  { %2226 = vrot.lane.b32.xlu1 %v4056_v1, %s3267_s2 }
 0x128   :  { %2051 = vrot.lane.b32.xlu0 %v4047_v4, %s3266_s0  ;;  %v4126_v40 = vpop.permute.xlu1 %2676 }
 0x129   :  { %5193 = vst [vmem:[#allocation36_spill] sm:$0xff] %v4126_v40 }
 0x12a   :  { %2047 = vrot.lane.b32.xlu1 %v4069_v53, %s3266_s0 }
 0x12c   :  { %2053 = vrot.lane.b32.xlu0 %v4081_v39, %s3266_s0 }
 0x12d   :  { %v4144_v17 = vpop.permute.xlu1 %2396 }
 0x12e   :  { %2240 = vrot.lane.b32.xlu1 %v4069_v53, %s3267_s2  ;;  %v1633_v53 = vmax.f32 %v1585_v30, 0.0  ;;  %5194 = vst [vmem:[#allocation37_spill] sm:$0xff] %v4144_v17  ;;  %v4148_v30 = vpop.permute.xlu0 %2404 }
 0x130   :  { %2246 = vrot.lane.b32.xlu0 %v4081_v39, %s3267_s2  ;;  %v1745_v57 = vmul.f32 %v3816_v7, %v1633_v53  ;;  %v1859_v7 = vadd.f32 %v3903_v47, %v1747_v18 }
 0x132   :  { %2238 = vrot.lane.b32.xlu1 %v4093_v16, %s3267_s2  ;;  %v4153_v42 = vadd.f32 %v3903_v47, %v1745_v57  ;;  %v4159_v54 = vpop.permute.xlu1 %2672  ;;  %v4163_v58 = vpop.permute.xlu0 %2392  ;;  %v4173_v57 = vadd.f32 %v3958_v19, %v1721_v41 }
 0x133   :  { %5195 = vst [vmem:[#allocation38_spill] sm:$0xff] %v4159_v54 }
 0x134   :  { %2049 = vrot.lane.b32.xlu0 %v4105_v51, %s3266_s0  ;;  %5196 = vst [vmem:[#allocation39_spill] sm:$0xff] %v4173_v57 }
 0x136   :  { %2045 = vrot.lane.b32.xlu1 %v4093_v16, %s3266_s0  ;;  %v4185_v26 = vpop.permute.xlu0 %2388 }
 0x138   :  { %2254 = vrot.lane.b32.xlu0 %v4115_v48, %s3267_s2 }
 0x13a   :  { %2055 = vrot.lane.b32.xlu1 %v4120_v25, %s3266_s0 }
 0x13c   :  { %2039 = vrot.lane.b32.xlu0 %v4026_v38, %s3266_s0  ;;  %v1632_v38 = vmax.f32 %v1584_v61, 0.0  ;;  %v4181_v61 = vpop.permute.xlu1 %2504 }
 0x13e   :  { %2248 = vrot.lane.b32.xlu1 %v4120_v25, %s3267_s2  ;;  %v1744_v53 = vmul.f32 %v3814_v6, %v1632_v38  ;;  %v1565_v6 = vadd.f32 %v3755_v34, %v3938_v56  ;;  %v4193_v34 = vmul.f32 %v3829_v62, %v1859_v7  ;;  %v4202_v56 = vpop.permute.xlu0 %2384  ;;  %v4229_v7 = vld [vmem:[%s5060_s3 + $0x28] sm:$0xff] }
 0x140   :  { %2017 = vrot.lane.b32.xlu0 %v4137_v0, %s3266_s0  ;;  %v1856_v38 = vadd.f32 %v3893_v36, %v1744_v53  ;;  %v1613_v14 = vmax.f32 %v1565_v6, 0.0  ;;  %v4195_v36 = vpop.permute.xlu1 %2668  ;;  %v1558_v53 = vadd.f32 %v3748_v32, %v3873_v9  ;;  %v3233_v9 = vld [vmem:[%s5060_s3 + $0x40] sm:$0xff] }
 0x141   :  { %5197 = vst [vmem:[#allocation40_spill] sm:$0xff] %v4195_v36 }
 0x142   :  { %2242 = vrot.lane.b32.xlu1 %v4105_v51, %s3267_s2  ;;  %v4188_v41 = vmul.f32 %v3829_v62, %v1856_v38  ;;  %v1725_v47 = vmul.f32 %v3797_v44, %v1613_v14  ;;  %v1606_v6 = vmax.f32 %v1558_v53, 0.0  ;;  %v1562_v38 = vadd.f32 %v3746_v31, %v3915_v12 }
 0x143   :  { %v5200_v12 = vmov 4  }
 0x144   :  { %2218 = vrot.lane.b32.xlu0 %v3991_v37, %s3267_s2  ;;  %v4209_v62 = vadd.f32 %v3953_v24, %v1725_v47  ;;  %v4211_v18 = vpop.permute.xlu1 %2500  ;;  %v1718_v14 = vmul.f32 %v3792_v35, %v1606_v6  ;;  %v1610_v47 = vmax.f32 %v1562_v38, 0.0  ;;  %v5216_v37 = vmov 5  }
 0x146   :  { %2059 = vrot.lane.b32.xlu1 %v4153_v42, %s3266_s0  ;;  %v1722_v6 = vmul.f32 %v3794_v50, %v1610_v47 }
 0x148   :  { %2380 = vperm.xlu0 %3218, %v4169_v33   ;;  %v4224_v24 = vpop.permute.xlu1 %2496  ;;  %v4257_v36 = vadd.f32 %v3958_v19, %v1722_v6 }
 0x14a   :  { %2252 = vrot.lane.b32.xlu1 %v4153_v42, %s3267_s2 }
 0x14c   :  { %2011 = vrot.lane.b32.xlu0 %v4173_v57, %s3266_s0 }
 0x14e   :  { %2061 = vrot.lane.b32.xlu1 %v4115_v48, %s3266_s0 }
 0x150   :  { %2250 = vrot.lane.b32.xlu0 %v4188_v41, %s3267_s2 }
 0x152   :  { %2256 = vrot.lane.b32.xlu1 %v4193_v34, %s3267_s2 }
 0x154   :  { %2057 = vrot.lane.b32.xlu0 %v4188_v41, %s3266_s0 }
 0x156   :  { %2063 = vrot.lane.b32.xlu1 %v4193_v34, %s3266_s0 }
 0x157   :  { %v4217_v44 = vpop.permute.xlu0 %1969  ;;  %v4238_v53 = vpop.permute.xlu1 %1971 }
 0x158   :  { %2212 = vrot.lane.b32.xlu0 %v4209_v62, %s3267_s2  ;;  %5198 = vst [vmem:[#allocation41_spill] sm:$0xff] %v4217_v44  ;;  %5201 = vst [vmem:[#allocation43_spill] sm:$0xff] %v4238_v53  ;;  %v4245_v44 = vadd.f32 %v3857_v13, %v1718_v14  ;;  %v1559_v53 = vadd.f32 %v3748_v32, %v3891_v63  ;;  %v4274_v32 = vld [vmem:[%s5060_s3 + $0x20] sm:$0xff] }
 0x15a   :  { %2660 = vperm.xlu1 %3223, %v3233_v9   ;;  %v1555_v9 = vadd.f32 %v3738_v28, %v3871_v10  ;;  %v1607_v14 = vmax.f32 %v1559_v53, 0.0  ;;  %v1552_v53 = vadd.f32 %v3740_v29, %v3849_v20 }
 0x15b   :  { %v4235_v31 = vpop.permute.xlu0 %1973  ;;  %v4259_v10 = vpop.permute.xlu1 %1979 }
 0x15c   :  { %2376 = vperm.xlu0 %3218, %v4229_v7   ;;  %5199 = vst [vmem:[#allocation42_spill] sm:$0xff] %v4235_v31  ;;  %v1603_v31 = vmax.f32 %v1555_v9, 0.0  ;;  %5203 = vst [vmem:[#allocation45_spill] sm:$0xff] %v4259_v10  ;;  %v1719_v19 = vmul.f32 %v3792_v35, %v1607_v14  ;;  %v1600_v35 = vmax.f32 %v1552_v53, 0.0 }
 0x15e   :  { %2222 = vrot.lane.b32.xlu1 %v3974_v2, %s3267_s2  ;;  %v1715_v50 = vmul.f32 %v3789_v49, %v1603_v31  ;;  %v4290_v6 = vadd.f32 %v3857_v13, %v1719_v19  ;;  %v4309_v13 = vld [vmem:[%s5060_s3 + $0x18] sm:$0xff]  ;;  %v1712_v19 = vmul.f32 %v3787_v43, %v1600_v35 }
 0x15f   :  { %3224 = vset.pattern.permute.xlu1 %v5200_v12  ;;  %v4252_v38 = vpop.permute.xlu0 %1981  ;;  %v4269_v9 = vpop.permute.xlu1 %1975 }
 0x160   :  { %2027 = vrot.lane.b32.xlu0 %v3956_v23, %s3266_s0  ;;  %5202 = vst [vmem:[#allocation44_spill] sm:$0xff] %v4252_v38  ;;  %5205 = vst [vmem:[#allocation47_spill] sm:$0xff] %v4269_v9  ;;  %v4278_v63 = vadd.f32 %v3879_v22, %v1715_v50  ;;  %v1556_v50 = vadd.f32 %v3738_v28, %v3889_v59  ;;  %v5211_v59 = vld [vmem:[#allocation8_spill] sm:$0xff] }
 0x162   :  { %2019 = vrot.lane.b32.xlu1 %v4209_v62, %s3266_s0  ;;  %v1604_v53 = vmax.f32 %v1556_v50, 0.0 }
 0x163   :  { %v4266_v47 = vpop.permute.xlu0 %1977  ;;  %v4292_v10 = vpop.permute.xlu1 %1983 }
 0x164   :  { %2005 = vrot.lane.b32.xlu0 %v4245_v44, %s3266_s0  ;;  %5204 = vst [vmem:[#allocation46_spill] sm:$0xff] %v4266_v47  ;;  %5207 = vst [vmem:[#allocation49_spill] sm:$0xff] %v4292_v10  ;;  %v5212_v47 = vld [vmem:[#allocation12_spill] sm:$0xff]  ;;  %v1716_v10 = vmul.f32 %v3789_v49, %v1604_v53 }
 0x165   :  { %v1553_v38 = vadd.f32 %v3740_v29, %v5212_v47 }
 0x166   :  { %2220 = vrot.lane.b32.xlu1 %v3956_v23, %s3267_s2 }
 0x167   :  { %v4283_v31 = vpop.permute.xlu0 %1989  ;;  %v4304_v20 = vpop.permute.xlu1 %1987 }
 0x168   :  { %2206 = vrot.lane.b32.xlu0 %v4257_v36, %s3267_s2  ;;  %5206 = vst [vmem:[#allocation48_spill] sm:$0xff] %v4283_v31  ;;  %5209 = vst [vmem:[#allocation51_spill] sm:$0xff] %v4304_v20  ;;  %v1601_v20 = vmax.f32 %v1553_v38, 0.0  ;;  %v4335_v31 = vadd.f32 %v3879_v22, %v1716_v10  ;;  %v2564_v22 = vmul.f32 %v4090_v27, %v4003_v8 }
 0x16a   :  { %2492 = vperm.xlu1 %3224, %v4169_v33   ;;  %5214 = vst [vmem:[#allocation12_spill] sm:$0xff] %v4335_v31  ;;  %v1713_v49 = vmul.f32 %v3787_v43, %v1601_v20 }
 0x16b   :  { %v4300_v14 = vpop.permute.xlu0 %1985 }
 0x16c   :  { %2372 = vperm.xlu0 %3218, %v4274_v32   ;;  %5208 = vst [vmem:[#allocation50_spill] sm:$0xff] %v4300_v14  ;;  %v4322_v14 = vadd.f32 %v5211_v59, %v1712_v19  ;;  %v4362_v20 = vadd.f32 %v5211_v59, %v1713_v49 }
 0x16e   :  { %2033 = vrot.lane.b32.xlu1 %v4056_v1, %s3266_s0  ;;  %5217 = vst [vmem:[#allocation54_spill] sm:$0xff] %v4362_v20 }
 0x170   :  { %1999 = vrot.lane.b32.xlu0 %v4278_v63, %s3266_s0 }
 0x172   :  { %2216 = vrot.lane.b32.xlu1 %v3986_v55, %s3267_s2  ;;  %v2565_v55 = vmul.f32 %v4090_v27, %v4014_v21 }
 0x174   :  { %2200 = vrot.lane.b32.xlu0 %v4290_v6, %s3267_s2 }
 0x176   :  { %2013 = vrot.lane.b32.xlu1 %v4257_v36, %s3266_s0 }
 0x178   :  { %2368 = vperm.xlu0 %3218, %v4309_v13  }
 0x17a   :  { %v4313_v9 = vpop.permute.xlu0 %2029  ;;  %2214 = vrot.lane.b32.xlu1 %v3968_v15, %s3267_s2 }
 0x17c   :  { %v4317_v28 = vpop.permute.xlu1 %2031  ;;  %2015 = vrot.lane.b32.xlu0 %v3965_v46, %s3266_s0 }
 0x17d   :  { %5210 = vst [vmem:[#allocation52_spill] sm:$0xff] %v4317_v28 }
 0x17e   :  { %v4327_v35 = vpop.permute.xlu0 %2023  ;;  %2488 = vperm.xlu1 %3224, %v4229_v7  }
 0x17f   :  { %5213 = vst [vmem:[#allocation8_spill] sm:$0xff] %v4327_v35 }
 0x180   :  { %v4330_v50 = vpop.permute.xlu1 %2025  ;;  %1993 = vrot.lane.b32.xlu0 %v4322_v14, %s3266_s0 }
 0x182   :  { %v4337_v19 = vpop.permute.xlu0 %2224  ;;  %3225 = vset.pattern.permute.xlu1 %v5216_v37 }
 0x183   :  { %5215 = vst [vmem:[#allocation53_spill] sm:$0xff] %v4337_v19  ;;  %2652 = vperm.xlu1 %3225, %v4169_v33   ;;  %v4355_v33 = vld [vmem:[%s5060_s3 + $0x10] sm:$0xff] }
 0x184   :  { %v2229_v29 = vpop.permute.xlu1 %2228  ;;  %2194 = vrot.lane.b32.xlu0 %v4335_v31, %s3267_s2 }
 0x186   :  { %v2036_v47 = vpop.permute.xlu0 %2035 }
 0x187   :  { %v2157_v53 = vsel %vm2065_vm3, 0.0, %v2036_v47  ;;  %2210 = vrot.lane.b32.xlu1 %v4137_v0, %s3267_s2 }
 0x188   :  { %v2452_v38 = vmul.f32 %v4108_v52, %v2157_v53  ;;  %v4350_v10 = vpop.permute.xlu1 %2037  ;;  %2364 = vperm.xlu0 %3218, %v4355_v33   ;;  %3226 = vset.pattern.permute.xlu1 %v5200_v12 }
 0x189   :  { %v2088_v43 = vsel %vm2065_vm3, %v2036_v47, %v4350_v10 }
 0x18a   :  { %v2612_v8 = vadd.f32 %v2564_v22, %v2452_v38  ;;  %v2453_v53 = vmul.f32 %v4108_v52, %v2088_v43  ;;  %v2231_v19 = vpop.permute.xlu0 %2230 }
 0x18b   :  { %v2281_v1 = vsel %vm2258_vm4, %v2229_v29, %v2231_v19  ;;  %2007 = vrot.lane.b32.xlu1 %v4290_v6, %s3266_s0 }
 0x18c   :  { %v2724_v2 = vmul.f32 %v4159_v54, %v2281_v1  ;;  %v4371_v17 = vpop.permute.xlu1 %2232  ;;  %2188 = vrot.lane.b32.xlu0 %v4362_v20, %s3267_s2  ;;  %v2613_v59 = vadd.f32 %v2565_v55, %v2453_v53  ;;  %v4385_v1 = vld [vmem:[%s5060_s3 + $0x8] sm:$0xff] }
 0x18d   :  { %5218 = vst [vmem:[#allocation55_spill] sm:$0xff] %v4371_v17  ;;  %v2282_v49 = vsel %vm2258_vm4, %v2231_v19, %v4371_v17 }
 0x18e   :  { %v4377_v47 = vadd.f32 %v2724_v2, %v2612_v8  ;;  %v2725_v21 = vmul.f32 %v4159_v54, %v2282_v49  ;;  %v2044_v22 = vpop.permute.xlu0 %2043  ;;  %v2568_v8 = vmul.f32 %v4095_v45, %v4032_v11 }
 0x18f   :  { %2208 = vrot.lane.b32.xlu1 %v3965_v46, %s3267_s2  ;;  %v5221_v46 = vld [vmem:[#allocation16_spill] sm:$0xff] }
 0x190   :  { %5219 = vst [vmem:[#allocation56_spill] sm:$0xff] %v4377_v47  ;;  %v2042_v29 = vpop.permute.xlu1 %2041  ;;  %2360 = vperm.xlu0 %3218, %v4385_v1   ;;  %v4388_v55 = vadd.f32 %v2725_v21, %v2613_v59  ;;  %v2567_v21 = vmul.f32 %v4095_v45, %v4036_v60 }
 0x191   :  { %v2090_v19 = vsel %vm2065_vm3, %v2042_v29, %v2044_v22  ;;  %v2158_v2 = vsel %vm2065_vm3, 0.0, %v2042_v29 }
 0x192   :  { %5220 = vst [vmem:[#allocation57_spill] sm:$0xff] %v4388_v55  ;;  %v2456_v38 = vmul.f32 %v4148_v30, %v2090_v19  ;;  %v4393_v43 = vpop.permute.xlu0 %2244  ;;  %v2455_v53 = vmul.f32 %v4148_v30, %v2158_v2  ;;  %v5223_v2 = vld [vmem:[#allocation17_spill] sm:$0xff] }
 0x193   :  { %2484 = vperm.xlu1 %3226, %v4274_v32  }
 0x194   :  { %v2235_v49 = vpop.permute.xlu1 %2234  ;;  %2003 = vrot.lane.b32.xlu0 %v5221_v46, %s3266_s0  ;;  %v2616_v59 = vadd.f32 %v2568_v8, %v2456_v38  ;;  %v2615_v47 = vadd.f32 %v2567_v21, %v2455_v53  ;;  %v4420_v8 = vld [vmem:[%s5060_s3] sm:$0xff] }
 0x196   :  { %v2237_v29 = vpop.permute.xlu0 %2236 }
 0x197   :  { %v2283_v19 = vsel %vm2258_vm4, %v2235_v49, %v2237_v29  ;;  %2021 = vrot.lane.b32.xlu1 %v3968_v15, %s3266_s0 }
 0x198   :  { %v2727_v11 = vmul.f32 %v4126_v40, %v2283_v19  ;;  %v4407_v55 = vpop.permute.xlu1 %2226  ;;  %2182 = vrot.lane.b32.xlu0 %v5223_v2, %s3267_s2  ;;  %v5226_v19 = vld [vmem:[#allocation28_spill] sm:$0xff] }
 0x199   :  { %5222 = vst [vmem:[#allocation58_spill] sm:$0xff] %v4407_v55 }
 0x19a   :  { %v4411_v54 = vadd.f32 %v2727_v11, %v2615_v47  ;;  %v2052_v38 = vpop.permute.xlu0 %2051  ;;  %v5225_v47 = vld [vmem:[#allocation30_spill] sm:$0xff] }
 0x19b   :  { %2204 = vrot.lane.b32.xlu1 %v4173_v57, %s3267_s2  ;;  %v2573_v21 = vmul.f32 %v5225_v47, %v4081_v39  ;;  %v5228_v57 = vld [vmem:[#allocation21_spill] sm:$0xff] }
 0x19c   :  { %5224 = vst [vmem:[#allocation59_spill] sm:$0xff] %v4411_v54  ;;  %v4415_v60 = vpop.permute.xlu1 %2047  ;;  %2356 = vperm.xlu0 %3218, %v4420_v8   ;;  %v3240_v54 = vld [vmem:[%s5060_s3 + $0x78] sm:$0xff] }
 0x19e   :  { %v2054_v53 = vpop.permute.xlu0 %2053 }
 0x19f   :  { %v2160_v49 = vsel %vm2065_vm3, 0.0, %v2054_v53  ;;  %2001 = vrot.lane.b32.xlu1 %v4335_v31, %s3266_s0 }
 0x1a0   :  { %v2461_v11 = vmul.f32 %v5226_v19, %v2160_v49  ;;  %v4429_v2 = vpop.permute.xlu1 %2240  ;;  %3230 = vset.pattern.permute.xlu0 %v5216_v37  ;;  %v3241_v49 = vld [vmem:[%s5060_s3 + $0x68] sm:$0xff] }
 0x1a1   :  { %5227 = vst [vmem:[#allocation30_spill] sm:$0xff] %v4429_v2  ;;  %2688 = vperm.xlu0 %3230, %v3240_v54   ;;  %v2572_v54 = vmul.f32 %v4059_v3, %v4047_v4  ;;  %v3242_v4 = vld [vmem:[%s5060_s3 + $0x48] sm:$0xff] }
 0x1a2   :  { %v2621_v17 = vadd.f32 %v2573_v21, %v2461_v11  ;;  %v2247_v55 = vpop.permute.xlu0 %2246 }
 0x1a3   :  { %2202 = vrot.lane.b32.xlu1 %v5228_v57, %s3267_s2 }
 0x1a4   :  { %v4437_v31 = vpop.permute.xlu1 %2238 }
 0x1a5   :  { %5229 = vst [vmem:[#allocation28_spill] sm:$0xff] %v4437_v31  ;;  %v2284_v39 = vsel %vm2258_vm4, %v2237_v29, %v4437_v31  ;;  %2680 = vperm.xlu0 %3230, %v3241_v49   ;;  %v2571_v49 = vmul.f32 %v4059_v3, %v4105_v51 }
 0x1a6   :  { %v2728_v2 = vmul.f32 %v4126_v40, %v2284_v39  ;;  %v2050_v35 = vpop.permute.xlu0 %2049 }
 0x1a7   :  { %v2092_v21 = vsel %vm2065_vm3, %v4415_v60, %v2050_v35  ;;  %v2093_v11 = vsel %vm2065_vm3, %v2050_v35, %v2052_v38  ;;  %2480 = vperm.xlu1 %3226, %v4309_v13   ;;  %v2569_v35 = vmul.f32 %v4095_v45, %v4093_v16  ;;  %v3243_v16 = vld [vmem:[%s5060_s3 + $0x38] sm:$0xff]  ;;  %v2574_v45 = vmul.f32 %v5225_v47, %v4120_v25 }
 0x1a8   :  { %v2459_v29 = vmul.f32 %v4130_v5, %v2092_v21  ;;  %v2460_v31 = vmul.f32 %v4130_v5, %v2093_v11  ;;  %v2046_v28 = vpop.permute.xlu1 %2045  ;;  %v4455_v39 = vadd.f32 %v2728_v2, %v2616_v59 }
 0x1a9   :  { %v2091_v40 = vsel %vm2065_vm3, %v2044_v22, %v2046_v28  ;;  %2664 = vperm.xlu0 %3230, %v3242_v4   ;;  %v5232_v4 = vld [vmem:[#allocation34_spill] sm:$0xff] }
 0x1aa   :  { %5230 = vst [vmem:[#allocation60_spill] sm:$0xff] %v4455_v39  ;;  %v4463_v38 = vadd.f32 %v2571_v49, %v2459_v29  ;;  %v4465_v21 = vadd.f32 %v2572_v54, %v2460_v31  ;;  %v2457_v11 = vmul.f32 %v4148_v30, %v2091_v40  ;;  %v2255_v51 = vpop.permute.xlu0 %2254  ;;  %v5231_v54 = vld [vmem:[#allocation29_spill] sm:$0xff]  ;;  %v5240_v39 = vld [vmem:[#allocation6_spill] sm:$0xff] }
 0x1ab   :  { %3227 = vset.pattern.permute.xlu1 %v5216_v37 }
 0x1ac   :  { %v4469_v59 = vadd.f32 %v2569_v35, %v2457_v11  ;;  %v4471_v28 = vpop.permute.xlu1 %2055  ;;  %2644 = vperm.xlu1 %3227, %v4274_v32   ;;  %v2566_v32 = vmul.f32 %v4090_v27, %v5231_v54 }
 0x1ad   :  { %v2094_v22 = vsel %vm2065_vm3, %v2054_v53, %v4471_v28  ;;  %2656 = vperm.xlu0 %3230, %v3243_v16   ;;  %v5234_v16 = vld [vmem:[#allocation27_spill] sm:$0xff] }
 0x1ae   :  { %v2462_v40 = vmul.f32 %v5226_v19, %v2094_v22  ;;  %v2040_v30 = vpop.permute.xlu0 %2039 }
 0x1af   :  { %v2089_v31 = vsel %vm2065_vm3, %v4350_v10, %v2040_v30 }
 0x1b0   :  { %v2622_v2 = vadd.f32 %v2574_v45, %v2462_v40  ;;  %v2454_v53 = vmul.f32 %v4108_v52, %v2089_v31  ;;  %v2249_v29 = vpop.permute.xlu1 %2248  ;;  %2198 = vrot.lane.b32.xlu1 %v4245_v44, %s3267_s2  ;;  %v5235_v31 = vld [vmem:[#allocation15_spill] sm:$0xff] }
 0x1b1   :  { %v2287_v49 = vsel %vm2258_vm4, %v2247_v55, %v2249_v29  ;;  %2648 = vperm.xlu0 %3230, %v4229_v7   ;;  %3228 = vset.pattern.permute.xlu1 %v5200_v12  ;;  %v5233_v55 = vld [vmem:[#allocation33_spill] sm:$0xff] }
 0x1b2   :  { %v4492_v25 = vadd.f32 %v2566_v32, %v2454_v53  ;;  %v2733_v10 = vmul.f32 %v5232_v4, %v2287_v49  ;;  %v4509_v7 = vpop.permute.xlu0 %2017  ;;  %v2576_v22 = vmul.f32 %v5233_v55, %v4153_v42  ;;  %v2577_v53 = vmul.f32 %v5233_v55, %v4115_v48  ;;  %v5238_v48 = vld [vmem:[#allocation19_spill] sm:$0xff] }
 0x1b4   :  { %v4495_v35 = vadd.f32 %v2733_v10, %v2621_v17  ;;  %v4497_v11 = vpop.permute.xlu1 %2242  ;;  %1995 = vrot.lane.b32.xlu1 %v4362_v20, %s3266_s0 }
 0x1b5   :  { %v4504_v27 = vsel %vm2258_vm4, %v4497_v11, %v4393_v43  ;;  %2640 = vperm.xlu0 %3230, %v4309_v13  }
 0x1b6   :  { %v4524_v54 = vpop.permute.xlu0 %2218 }
 0x1b8   :  { %v2060_v52 = vpop.permute.xlu1 %2059  ;;  %2196 = vrot.lane.b32.xlu1 %v5221_v46, %s3267_s2 }
 0x1b9   :  { %v2161_v17 = vsel %vm2065_vm3, 0.0, %v2060_v52  ;;  %2632 = vperm.xlu0 %3230, %v4385_v1  }
 0x1ba   :  { %v2464_v45 = vmul.f32 %v5234_v16, %v2161_v17 }
 0x1bc   :  { %v4516_v40 = vadd.f32 %v2576_v22, %v2464_v45  ;;  %v2253_v30 = vpop.permute.xlu1 %2252  ;;  %2476 = vperm.xlu1 %3228, %v4355_v33  }
 0x1bd   :  { %v4520_v13 = vsel %vm2258_vm4, %v2253_v30, %v2255_v51  ;;  %2176 = vrot.lane.b32.xlu0 %v5235_v31, %s3267_s2 }
 0x1c0   :  { %v2062_v32 = vpop.permute.xlu1 %2061  ;;  %2009 = vrot.lane.b32.xlu1 %v5228_v57, %s3266_s0 }
 0x1c1   :  { %v2096_v42 = vsel %vm2065_vm3, %v2060_v52, %v2062_v32  ;;  %2628 = vperm.xlu0 %3230, %v4420_v8   ;;  %v5237_v52 = vld [vmem:[#allocation10_spill] sm:$0xff] }
 0x1c2   :  { %v2465_v49 = vmul.f32 %v5234_v16, %v2096_v42 }
 0x1c3   :  { %v4533_v10 = vpop.permute.xlu0 %2380 }
 0x1c4   :  { %5236 = vst [vmem:[#allocation29_spill] sm:$0xff] %v4533_v10  ;;  %v4535_v17 = vadd.f32 %v2577_v53, %v2465_v49  ;;  %2192 = vrot.lane.b32.xlu1 %v4278_v63, %s3267_s2  ;;  %v4539_v22 = vpop.permute.xlu1 %2256  ;;  %v5239_v49 = vld [vmem:[#allocation9_spill] sm:$0xff] }
 0x1c5   :  { %v4543_v45 = vsel %vm2258_vm4, %v2255_v51, %v4539_v22  ;;  %2174 = vrot.lane.b32.xlu0 %v5237_v52, %s3267_s2  ;;  %v2578_v51 = vmul.f32 %v5233_v55, %v4193_v34 }
 0x1c7   :  { %v4547_v30 = vpop.permute.xlu0 %2011 }
 0x1c8   :  { %2190 = vrot.lane.b32.xlu1 %v5238_v48, %s3267_s2  ;;  %v2064_v42 = vpop.permute.xlu1 %2063 }
 0x1c9   :  { %v2097_v53 = vsel %vm2065_vm3, %v2062_v32, %v2064_v42  ;;  %2172 = vrot.lane.b32.xlu0 %v5239_v49, %s3267_s2 }
 0x1ca   :  { %v2466_v31 = vmul.f32 %v5234_v16, %v2097_v53 }
 0x1cb   :  { %v2251_v20 = vpop.permute.xlu0 %2250 }
 0x1cc   :  { %v4557_v46 = vadd.f32 %v2578_v51, %v2466_v31  ;;  %v2288_v52 = vsel %vm2258_vm4, %v2249_v29, %v2251_v20  ;;  %2472 = vperm.xlu1 %3228, %v4385_v1   ;;  %v2353_v16 = vsel %vm2258_vm4, %v2251_v20, 0.0  ;;  %v2575_v1 = vmul.f32 %v5225_v47, %v4188_v41  ;;  %v5241_v29 = vld [vmem:[#allocation5_spill] sm:$0xff] }
 0x1cd   :  { %v2734_v57 = vmul.f32 %v5232_v4, %v2288_v52  ;;  %2164 = vrot.lane.b32.xlu0 %v5240_v39, %s3267_s2  ;;  %v2556_v51 = vmul.f32 %v4211_v18, %v4209_v62  ;;  %v5246_v62 = vld [vmem:[#allocation18_spill] sm:$0xff] }
 0x1cf   :  { %v2058_v32 = vpop.permute.xlu0 %2057  ;;  %v4564_v42 = vadd.f32 %v2734_v57, %v2622_v2  ;;  %v2735_v57 = vmul.f32 %v5232_v4, %v2353_v16  ;;  %v2560_v4 = vmul.f32 %v4181_v61, %v3956_v23 }
 0x1d0   :  { %v2095_v34 = vsel %vm2065_vm3, %v4471_v28, %v2058_v32  ;;  %3229 = vset.pattern.permute.xlu1 %v5216_v37 }
 0x1d1   :  { %v2463_v55 = vmul.f32 %v5226_v19, %v2095_v34  ;;  %2636 = vperm.xlu1 %3229, %v4355_v33   ;;  %2162 = vrot.lane.b32.xlu0 %v5241_v29, %s3267_s2  ;;  %v5243_v33 = vld [vmem:[#allocation13_spill] sm:$0xff] }
 0x1d3   :  { %v2623_v2 = vadd.f32 %v2575_v1, %v2463_v55  ;;  %v4577_v31 = vpop.permute.xlu0 %2212 }
 0x1d5   :  { %v4579_v20 = vadd.f32 %v2735_v57, %v2623_v2  ;;  %2186 = vrot.lane.b32.xlu1 %v4322_v14, %s3267_s2  ;;  %v4583_v37 = vpop.permute.xlu1 %2660 }
 0x1d6   :  { %3231 = vset.pattern.permute.xlu1 %v5200_v12 }
 0x1d7   :  { %v4586_v41 = vpop.permute.xlu0 %2376 }
 0x1d8   :  { %5242 = vst [vmem:[#allocation34_spill] sm:$0xff] %v4586_v41 }
 0x1d9   :  { %2184 = vrot.lane.b32.xlu1 %v5243_v33, %s3267_s2  ;;  %v4590_v47 = vpop.permute.xlu1 %2222 }
 0x1db   :  { %v2028_v19 = vpop.permute.xlu0 %2027 }
 0x1dc   :  { %v2085_v28 = vsel %vm2065_vm3, %v4330_v50, %v2028_v19 }
 0x1dd   :  { %v2448_v52 = vmul.f32 %v4163_v58, %v2085_v28  ;;  %2468 = vperm.xlu1 %3231, %v4420_v8   ;;  %v4598_v53 = vpop.permute.xlu1 %2019 }
 0x1de   :  { %v2082_v12 = vsel %vm2065_vm3, %v4509_v7, %v4598_v53 }
 0x1df   :  { %v4605_v32 = vadd.f32 %v2560_v4, %v2448_v52  ;;  %v2444_v16 = vmul.f32 %v4185_v26, %v2082_v12  ;;  %v2006_v34 = vpop.permute.xlu0 %2005  ;;  %v5250_v12 = vld [vmem:[#allocation20_spill] sm:$0xff] }
 0x1e0   :  { %v2152_v1 = vsel %vm2065_vm3, 0.0, %v2006_v34 }
 0x1e1   :  { %5244 = vst [vmem:[#allocation33_spill] sm:$0xff] %v4605_v32  ;;  %v2604_v55 = vadd.f32 %v2556_v51, %v2444_v16  ;;  %1997 = vrot.lane.b32.xlu1 %v5238_v48, %s3266_s0  ;;  %v4610_v23 = vpop.permute.xlu1 %2220  ;;  %v2437_v19 = vmul.f32 %v4533_v10, %v2152_v1 }
 0x1e2   :  { %v4615_v8 = vsel %vm2258_vm4, %v4524_v54, %v4610_v23 }
 0x1e3   :  { %v4618_v57 = vpop.permute.xlu0 %2206 }
 0x1e4   :  { %5245 = vst [vmem:[#allocation27_spill] sm:$0xff] %v4618_v57 }
 0x1e5   :  { %2180 = vrot.lane.b32.xlu1 %v5246_v62, %s3267_s2  ;;  %v4622_v2 = vpop.permute.xlu1 %2492  ;;  %v5256_v62 = vld [vmem:[#allocation11_spill] sm:$0xff] }
 0x1e6   :  { %5247 = vst [vmem:[#allocation61_spill] sm:$0xff] %v4622_v2  ;;  %v2549_v28 = vmul.f32 %v4622_v2, %v4245_v44  ;;  %v5253_v44 = vld [vmem:[#allocation14_spill] sm:$0xff] }
 0x1e7   :  { %v4627_v4 = vpop.permute.xlu0 %2372 }
 0x1e8   :  { %5248 = vst [vmem:[#allocation62_spill] sm:$0xff] %v4627_v4  ;;  %v4629_v52 = vadd.f32 %v2549_v28, %v2437_v19  ;;  %v2553_v28 = vmul.f32 %v4224_v24, %v4257_v36  ;;  %v5257_v36 = vld [vmem:[#allocation7_spill] sm:$0xff] }
 0x1e9   :  { %2178 = vrot.lane.b32.xlu1 %v5250_v12, %s3267_s2  ;;  %v4633_v51 = vpop.permute.xlu1 %2033 }
 0x1ea   :  { %5249 = vst [vmem:[#allocation63_spill] sm:$0xff] %v4629_v52 }
 0x1eb   :  { %v4635_v16 = vpop.permute.xlu0 %1999 }
 0x1ec   :  { %5251 = vst [vmem:[#allocation64_spill] sm:$0xff] %v4635_v16  ;;  %v2151_v52 = vsel %vm2065_vm3, 0.0, %v4635_v16  ;;  %v5261_v16 = vmov 0.0  }
 0x1ed   :  { %1991 = vrot.lane.b32.xlu1 %v5243_v33, %s3266_s0  ;;  %v4639_v39 = vpop.permute.xlu1 %2216  ;;  %3190 = vmatprep.mubr.msk.f32.mxu0 %vm3268_vm5, %v5261_v16 }
 0x1ef   :  { %v4641_v1 = vpop.permute.xlu0 %2200 }
 0x1f0   :  { %5252 = vst [vmem:[#allocation65_spill] sm:$0xff] %v4641_v1 }
 0x1f1   :  { %2170 = vrot.lane.b32.xlu1 %v5253_v44, %s3267_s2  ;;  %v4645_v29 = vpop.permute.xlu1 %2013 }
 0x1f2   :  { %v2080_v19 = vsel %vm2065_vm3, %v4547_v30, %v4645_v29 }
 0x1f3   :  { %v2441_v12 = vmul.f32 %v4202_v56, %v2080_v19  ;;  %v4653_v49 = vpop.permute.xlu0 %2368 }
 0x1f4   :  { %5254 = vst [vmem:[#allocation66_spill] sm:$0xff] %v4653_v49 }
 0x1f5   :  { %v4655_v33 = vadd.f32 %v2553_v28, %v2441_v12  ;;  %2168 = vrot.lane.b32.xlu1 %v5256_v62, %s3267_s2  ;;  %v2215_v48 = vpop.permute.xlu1 %2214  ;;  %v2434_v28 = vmul.f32 %v4586_v41, %v2151_v52  ;;  %v2555_v52 = vmul.f32 %v4211_v18, %v4137_v0  ;;  %v2550_v0 = vmul.f32 %v4622_v2, %v4290_v6 }
 0x1f6   :  { %v2276_v44 = vsel %vm2258_vm4, %v4577_v31, %v2215_v48 }
 0x1f7   :  { %5255 = vst [vmem:[#allocation67_spill] sm:$0xff] %v4655_v33  ;;  %v2716_v1 = vmul.f32 %v4583_v37, %v2276_v44  ;;  %v4664_v32 = vpop.permute.xlu0 %2015  ;;  %v2154_v44 = vsel %vm2065_vm3, 0.0, %v4509_v7 }
 0x1f9   :  { %2166 = vrot.lane.b32.xlu1 %v5257_v36, %s3267_s2  ;;  %v4668_v19 = vpop.permute.xlu1 %2488  ;;  %v4670_v12 = vadd.f32 %v2716_v1, %v2604_v55  ;;  %v2443_v55 = vmul.f32 %v4185_v26, %v2154_v44 }
 0x1fa   :  { %5258 = vst [vmem:[#allocation68_spill] sm:$0xff] %v4668_v19  ;;  %v2546_v62 = vmul.f32 %v4668_v19, %v4278_v63 }
 0x1fb   :  { %v4675_v49 = vpop.permute.xlu0 %1993 }
 0x1fc   :  { %5259 = vst [vmem:[#allocation69_spill] sm:$0xff] %v4675_v49  ;;  %v4677_v33 = vadd.f32 %v2546_v62, %v2434_v28  ;;  %v2603_v28 = vadd.f32 %v2555_v52, %v2443_v55  ;;  %v2150_v52 = vsel %vm2065_vm3, 0.0, %v4675_v49  ;;  %v5276_v49 = vld [vmem:[#allocation23_spill] sm:$0xff] }
 0x1fe   :  { %5260 = vst [vmem:[#allocation70_spill] sm:$0xff] %v4677_v33  ;;  %v4682_v36 = vpop.permute.xlu1 %2652 }
 0x1ff   :  { %v4684_v57 = vpop.permute.xlu0 %2194 }
 0x200   :  { %5262 = vst [vmem:[#allocation71_spill] sm:$0xff] %v4684_v57 }
 0x202   :  { %v2211_v63 = vpop.permute.xlu1 %2210 }
 0x203   :  { %v2275_v62 = vsel %vm2258_vm4, %v2211_v63, %v4577_v31  ;;  %v4691_v1 = vpop.permute.xlu0 %2364 }
 0x204   :  { %5263 = vst [vmem:[#allocation72_spill] sm:$0xff] %v4691_v1  ;;  %v2715_v7 = vmul.f32 %v4583_v37, %v2275_v62  ;;  %v2557_v1 = vmul.f32 %v4211_v18, %v3968_v15  ;;  %v5274_v18 = vld [vmem:[#allocation37_spill] sm:$0xff] }
 0x206   :  { %v4694_v33 = vadd.f32 %v2715_v7, %v2603_v28  ;;  %v4696_v19 = vpop.permute.xlu1 %2007 }
 0x207   :  { %5264 = vst [vmem:[#allocation73_spill] sm:$0xff] %v4696_v19  ;;  %v2078_v57 = vsel %vm2065_vm3, %v2006_v34, %v4696_v19  ;;  %v4700_v44 = vpop.permute.xlu0 %2188  ;;  %v2431_v34 = vmul.f32 %v4627_v4, %v2150_v52  ;;  %v2156_v52 = vsel %vm2065_vm3, 0.0, %v4313_v9  ;;  %v5285_v19 = vld [vmem:[#allocation53_spill] sm:$0xff] }
 0x208   :  { %5265 = vst [vmem:[#allocation74_spill] sm:$0xff] %v4700_v44  ;;  %v2438_v41 = vmul.f32 %v4533_v10, %v2078_v57  ;;  %v2347_v57 = vsel %vm2258_vm4, %v2215_v48, 0.0  ;;  %v5272_v44 = vld [vmem:[#allocation52_spill] sm:$0xff]  ;;  %v5277_v10 = vld [vmem:[#allocation35_spill] sm:$0xff] }
 0x20a   :  { %v4705_v31 = vadd.f32 %v2550_v0, %v2438_v41  ;;  %v4707_v63 = vpop.permute.xlu1 %2208 }
 0x20b   :  { %v4709_v55 = vpop.permute.xlu0 %2360 }
 0x20c   :  { %5266 = vst [vmem:[#allocation75_spill] sm:$0xff] %v4705_v31  ;;  %5267 = vst [vmem:[#allocation76_spill] sm:$0xff] %v4709_v55 }
 0x20e   :  { %v4713_v62 = vpop.permute.xlu1 %2484 }
 0x20f   :  { %5268 = vst [vmem:[#allocation77_spill] sm:$0xff] %v4713_v62  ;;  %v2543_v28 = vmul.f32 %v4713_v62, %v4322_v14  ;;  %v4718_v7 = vpop.permute.xlu0 %2003  ;;  %v2086_v14 = vsel %vm2065_vm3, %v4313_v9, %v5272_v44 }
 0x210   :  { %5269 = vst [vmem:[#allocation78_spill] sm:$0xff] %v4718_v7  ;;  %v2450_v62 = vmul.f32 %v5274_v18, %v2086_v14 }
 0x211   :  { %v4720_v6 = vadd.f32 %v2543_v28, %v2431_v34  ;;  %v5273_v28 = vld [vmem:[#allocation8_spill] sm:$0xff] }
 0x212   :  { %v2022_v41 = vpop.permute.xlu1 %2021  ;;  %v2155_v48 = vsel %vm2065_vm3, 0.0, %v5273_v28 }
 0x213   :  { %5270 = vst [vmem:[#allocation79_spill] sm:$0xff] %v4720_v6  ;;  %v2083_v0 = vsel %vm2065_vm3, %v4598_v53, %v2022_v41  ;;  %v4725_v55 = vpop.permute.xlu0 %2182  ;;  %v2084_v53 = vsel %vm2065_vm3, %v5273_v28, %v4330_v50  ;;  %v2717_v41 = vmul.f32 %v4583_v37, %v2347_v57  ;;  %v2449_v6 = vmul.f32 %v5274_v18, %v2156_v52  ;;  %v5279_v52 = vld [vmem:[#allocation31_spill] sm:$0xff] }
 0x214   :  { %5271 = vst [vmem:[#allocation80_spill] sm:$0xff] %v4725_v55  ;;  %v2445_v34 = vmul.f32 %v4185_v26, %v2083_v0  ;;  %v2446_v26 = vmul.f32 %v4163_v58, %v2155_v48  ;;  %v2447_v9 = vmul.f32 %v4163_v58, %v2084_v53  ;;  %v2561_v50 = vmul.f32 %v5277_v10, %v5276_v49  ;;  %v5281_v48 = vld [vmem:[#allocation26_spill] sm:$0xff]  ;;  %v5282_v53 = vld [vmem:[#allocation32_spill] sm:$0xff] }
 0x215   :  { %v2159_v37 = vsel %vm2065_vm3, 0.0, %v4415_v60  ;;  %v2563_v14 = vmul.f32 %v5277_v10, %v5279_v52  ;;  %v2559_v58 = vmul.f32 %v4181_v61, %v5281_v48  ;;  %v2570_v49 = vmul.f32 %v4059_v3, %v5282_v53  ;;  %v5284_v48 = vld [vmem:[#allocation58_spill] sm:$0xff] }
 0x216   :  { %v2605_v55 = vadd.f32 %v2557_v1, %v2445_v34  ;;  %v4741_v15 = vpop.permute.xlu1 %2204  ;;  %v5278_v1 = vld [vmem:[#allocation24_spill] sm:$0xff]  ;;  %v5280_v34 = vld [vmem:[#allocation25_spill] sm:$0xff]  ;;  %v2354_v52 = vsel %vm2258_vm4, %v4539_v22, 0.0  ;;  %v2280_v7 = vsel %vm2258_vm4, %v5285_v19, %v5284_v48  ;;  %v2349_v22 = vsel %vm2258_vm4, %v5284_v48, 0.0 }
 0x217   :  { %v4745_v4 = vpop.permute.xlu0 %2356  ;;  %v2562_v57 = vmul.f32 %v5277_v10, %v5278_v1  ;;  %v2558_v28 = vmul.f32 %v4181_v61, %v5280_v34  ;;  %v2458_v10 = vmul.f32 %v4130_v5, %v2159_v37  ;;  %v2607_v61 = vadd.f32 %v2559_v58, %v2447_v9  ;;  %v5287_v37 = vld [vmem:[#allocation28_spill] sm:$0xff] }
 0x218   :  { %5275 = vst [vmem:[#allocation52_spill] sm:$0xff] %v4745_v4  ;;  %v4749_v0 = vadd.f32 %v2717_v41, %v2605_v55  ;;  %v5283_v41 = vld [vmem:[#allocation39_spill] sm:$0xff]  ;;  %v4769_v4 = vadd.f32 %v2561_v50, %v2449_v6  ;;  %v2352_v5 = vsel %vm2258_vm4, %v4393_v43, 0.0  ;;  %v5288_v43 = vld [vmem:[#allocation40_spill] sm:$0xff] }
 0x219   :  { %v2552_v60 = vmul.f32 %v4224_v24, %v5283_v41  ;;  %v2610_v1 = vadd.f32 %v2562_v57, %v2450_v62  ;;  %v4771_v2 = vadd.f32 %v2558_v28, %v2446_v26  ;;  %v5286_v50 = vld [vmem:[#allocation55_spill] sm:$0xff]  ;;  %v2153_v26 = vsel %vm2065_vm3, 0.0, %v4547_v30 }
 0x21a   :  { %v4763_v55 = vpop.permute.xlu1 %2001  ;;  %v2350_v62 = vsel %vm2258_vm4, %v5286_v50, 0.0  ;;  %v2722_v58 = vmul.f32 %v5288_v43, %v2280_v7  ;;  %v2618_v41 = vadd.f32 %v2570_v49, %v2458_v10  ;;  %v2440_v50 = vmul.f32 %v4202_v56, %v2153_v26 }
 0x21c   :  { %v2689_v34 = vpop.permute.xlu0 %2688 }
 0x21d   :  { %v2736_v3 = vmul.f32 %v2689_v34, %v4520_v13  ;;  %v2737_v53 = vmul.f32 %v2689_v34, %v4543_v45  ;;  %v2738_v6 = vmul.f32 %v2689_v34, %v2354_v52  ;;  %v2351_v13 = vsel %vm2258_vm4, %v5287_v37, 0.0  ;;  %v5289_v52 = vld [vmem:[#allocation30_spill] sm:$0xff] }
 0x21e   :  { %v4789_v9 = vpop.permute.xlu1 %2202  ;;  %v2087_v45 = vsel %vm2065_vm3, %v5272_v44, %v4633_v51  ;;  %v2285_v30 = vsel %vm2258_vm4, %v5289_v52, %v4497_v11  ;;  %v2723_v11 = vmul.f32 %v5288_v43, %v2349_v22  ;;  %v2600_v22 = vadd.f32 %v2552_v60, %v2440_v50  ;;  %v5299_v52 = vld [vmem:[#allocation67_spill] sm:$0xff] }
 0x21f   :  { %v2784_v57 = vadd.f32 %v2736_v3, %v4516_v40  ;;  %v2786_v28 = vadd.f32 %v2738_v6, %v4557_v46  ;;  %v2785_v48 = vadd.f32 %v2737_v53, %v4535_v17  ;;  %v5290_v40 = vld [vmem:[#allocation38_spill] sm:$0xff]  ;;  %v5291_v46 = vld [vmem:[#allocation36_spill] sm:$0xff]  ;;  %v2451_v7 = vmul.f32 %v5274_v18, %v2087_v45 }
 0x220   :  { %v2681_v34 = vpop.permute.xlu0 %2680  ;;  %v2726_v44 = vmul.f32 %v5290_v40, %v2350_v62  ;;  %v2729_v3 = vmul.f32 %v5291_v46, %v2351_v13  ;;  %v2279_v17 = vsel %vm2258_vm4, %v4590_v47, %v5285_v19  ;;  %v2770_v62 = vadd.f32 %v2722_v58, %v2610_v1  ;;  %v5298_v58 = vld [vmem:[#allocation56_spill] sm:$0xff] }
 0x221   :  { %v2730_v37 = vmul.f32 %v2681_v34, %v2285_v30  ;;  %v2731_v31 = vmul.f32 %v2681_v34, %v4504_v27  ;;  %v2732_v51 = vmul.f32 %v2681_v34, %v2352_v5  ;;  %3159 = vmatpush3.msra.mxu0 %v2786_v28  ;;  %2790 = vmatprep.subr.mxu1 %v2785_v48  ;;  %v2348_v47 = vsel %vm2258_vm4, %v4610_v23, 0.0  ;;  %v5292_v23 = vld [vmem:[#allocation27_spill] sm:$0xff]  ;;  %v5300_v34 = vld [vmem:[#allocation22_spill] sm:$0xff] }
 0x222   :  { %v4808_v49 = vpop.permute.xlu1 %2480  ;;  %3160 = vmatprep.subr.mxu0 %v5261_v16  ;;  %2791 = vmatpush1.msra.mxu1 %v2784_v57  ;;  %v2777_v53 = vadd.f32 %v2729_v3, %v4469_v59  ;;  %v2774_v5 = vadd.f32 %v2726_v44, %v4492_v25  ;;  %v2721_v59 = vmul.f32 %v5288_v43, %v2279_v17  ;;  %v5297_v57 = vld [vmem:[#allocation65_spill] sm:$0xff] }
 0x223   :  { %v2778_v27 = vadd.f32 %v2730_v37, %v2618_v41  ;;  %v2780_v10 = vadd.f32 %v2732_v51, %v4465_v21  ;;  %2792 = vmatprep.subr.mxu1 %v4564_v42  ;;  %3161 = vmatpush3.msra.mxu0 %v4579_v20  ;;  %v2779_v6 = vadd.f32 %v2731_v31, %v4463_v38  ;;  %v5301_v51 = vld [vmem:[#allocation64_spill] sm:$0xff] }
 0x224   :  { %v2665_v18 = vpop.permute.xlu0 %2664  ;;  %2793 = vmatpush1.msra.mxu1 %v4495_v35  ;;  %v2611_v19 = vadd.f32 %v2563_v14, %v2451_v7  ;;  %3162 = vmatprep.subr.mxu0 %v5261_v16  ;;  %v2277_v38 = vsel %vm2258_vm4, %v4639_v39, %v4524_v54  ;;  %v2081_v25 = vsel %vm2065_vm3, %v4645_v29, %v4664_v32  ;;  %v5293_v14 = vld [vmem:[#allocation33_spill] sm:$0xff]  ;;  %v5294_v39 = vld [vmem:[#allocation60_spill] sm:$0xff]  ;;  %v5295_v32 = vld [vmem:[#allocation59_spill] sm:$0xff] }
 0x225   :  { %v2719_v21 = vmul.f32 %v2665_v18, %v4615_v8  ;;  %v2720_v42 = vmul.f32 %v2665_v18, %v2348_v47  ;;  %2794 = vmatprep.subr.mxu1 %v2779_v6  ;;  %3163 = vmatpush3.msra.mxu0 %v2780_v10  ;;  %v2274_v8 = vsel %vm2258_vm4, %v5292_v23, %v4707_v63  ;;  %v5305_v10 = vld [vmem:[#allocation68_spill] sm:$0xff] }
 0x226   :  { %2795 = vmatpush1.msra.mxu1 %v2778_v27  ;;  %v2273_v31 = vsel %vm2258_vm4, %v4741_v15, %v5292_v23  ;;  %3164 = vmatprep.subr.mxu0 %v5261_v16  ;;  %v2718_v29 = vmul.f32 %v2665_v18, %v2277_v38  ;;  %v2769_v26 = vadd.f32 %v2721_v59, %v4769_v4  ;;  %v5296_v15 = vld [vmem:[#allocation57_spill] sm:$0xff]  ;;  %v2346_v4 = vsel %vm2258_vm4, %v4707_v63, 0.0  ;;  %v5304_v27 = vld [vmem:[#allocation12_spill] sm:$0xff]  ;;  %v5306_v18 = vld [vmem:[#allocation63_spill] sm:$0xff] }
 0x227   :  { %v4833_v35 = vpop.permute.xlu1 %2644  ;;  %v2767_v20 = vadd.f32 %v2719_v21, %v2607_v61  ;;  %v2768_v60 = vadd.f32 %v2720_v42, %v5293_v14  ;;  %2796 = vmatprep.subr.mxu1 %v5294_v39  ;;  %3165 = vmatpush3.msra.mxu0 %v2777_v53  ;;  %v2771_v13 = vadd.f32 %v2723_v11, %v2611_v19  ;;  %v5303_v11 = vld [vmem:[#allocation75_spill] sm:$0xff]  ;;  %v5308_v59 = vld [vmem:[#allocation78_spill] sm:$0xff]  ;;  %v2345_v38 = vsel %vm2258_vm4, %v4789_v9, 0.0  ;;  %v5312_v39 = vld [vmem:[#allocation29_spill] sm:$0xff] }
 0x228   :  { %v2657_v54 = vpop.permute.xlu0 %2656  ;;  %2797 = vmatpush1.msra.mxu1 %v5295_v32  ;;  %v2442_v45 = vmul.f32 %v4202_v56, %v2081_v25  ;;  %3166 = vmatprep.subr.mxu0 %v5261_v16  ;;  %v2272_v28 = vsel %vm2258_vm4, %v5297_v57, %v4789_v9  ;;  %v2554_v48 = vmul.f32 %v4224_v24, %v5300_v34  ;;  %v5314_v32 = vld [vmem:[#allocation16_spill] sm:$0xff] }
 0x229   :  { %v2712_v1 = vmul.f32 %v2657_v54, %v2273_v31  ;;  %v2713_v61 = vmul.f32 %v2657_v54, %v2274_v8  ;;  %2798 = vmatprep.subr.mxu1 %v5296_v15  ;;  %3167 = vmatpush3.msra.mxu0 %v2774_v5  ;;  %v2766_v50 = vadd.f32 %v2718_v29, %v4771_v2  ;;  %v5302_v2 = vld [vmem:[#allocation34_spill] sm:$0xff]  ;;  %v5307_v5 = vld [vmem:[#allocation71_spill] sm:$0xff]  ;;  %v5310_v8 = vld [vmem:[#allocation21_spill] sm:$0xff] }
 0x22a   :  { %2799 = vmatpush1.msra.mxu1 %v5298_v58  ;;  %3168 = vmatprep.subr.mxu0 %v5261_v16  ;;  %v2714_v37 = vmul.f32 %v2657_v54, %v2346_v4  ;;  %v2076_v40 = vsel %vm2065_vm3, %v5301_v51, %v4763_v55  ;;  %v2710_v63 = vmul.f32 %v4682_v36, %v2272_v28  ;;  %v5311_v31 = vld [vmem:[#allocation61_spill] sm:$0xff] }
 0x22b   :  { %v2760_v43 = vadd.f32 %v2712_v1, %v2600_v22  ;;  %v2199_v41 = vpop.permute.xlu1 %2198  ;;  %v2761_v30 = vadd.f32 %v2713_v61, %v5299_v52  ;;  %2800 = vmatprep.subr.mxu1 %v2770_v62  ;;  %3169 = vmatpush3.msra.mxu0 %v2771_v13  ;;  %v2602_v44 = vadd.f32 %v2554_v48, %v2442_v45  ;;  %v5313_v29 = vld [vmem:[#allocation69_spill] sm:$0xff] }
 0x22c   :  { %v2271_v56 = vsel %vm2258_vm4, %v2199_v41, %v5297_v57  ;;  %2801 = vmatpush1.msra.mxu1 %v2769_v26  ;;  %3170 = vmatprep.subr.mxu0 %v5261_v16  ;;  %v2435_v3 = vmul.f32 %v5302_v2, %v2076_v40  ;;  %v2758_v17 = vadd.f32 %v2710_v63, %v5303_v11  ;;  %v2649_v62 = vpop.permute.xlu0 %2648  ;;  %v5315_v57 = vld [vmem:[#allocation62_spill] sm:$0xff]  ;;  %v5317_v52 = vld [vmem:[#allocation77_spill] sm:$0xff] }
 0x22d   :  { %2802 = vmatprep.subr.mxu1 %v2767_v20  ;;  %v2709_v46 = vmul.f32 %v4682_v36, %v2271_v56  ;;  %3171 = vmatpush3.msra.mxu0 %v2768_v60  ;;  %v2762_v7 = vadd.f32 %v2714_v37, %v2602_v44  ;;  %v2547_v53 = vmul.f32 %v5305_v10, %v5304_v27  ;;  %v5309_v20 = vld [vmem:[#allocation73_spill] sm:$0xff]  ;;  %v5316_v41 = vld [vmem:[#allocation54_spill] sm:$0xff] }
 0x22e   :  { %2803 = vmatpush1.msra.mxu1 %v2766_v50  ;;  %3172 = vmatprep.subr.mxu0 %v5261_v16  ;;  %v2077_v19 = vsel %vm2065_vm3, %v4763_v55, %v5308_v59  ;;  %v2551_v14 = vmul.f32 %v5311_v31, %v5310_v8  ;;  %v2548_v1 = vmul.f32 %v5305_v10, %v5314_v32  ;;  %v5318_v56 = vld [vmem:[#allocation70_spill] sm:$0xff]  ;;  %v5320_v11 = vld [vmem:[#allocation17_spill] sm:$0xff]  ;;  %v5321_v10 = vld [vmem:[#allocation48_spill] sm:$0xff] }
 0x22f   :  { %v4868_v24 = vpop.permute.xlu1 %1995  ;;  %2804 = vmatprep.subr.mxu1 %v4670_v12  ;;  %3173 = vmatpush3.msra.mxu0 %v4749_v0  ;;  %v2757_v6 = vadd.f32 %v2709_v46, %v5306_v18  ;;  %v2436_v60 = vmul.f32 %v5302_v2, %v2077_v19  ;;  %v2711_v9 = vmul.f32 %v4682_v36, %v2345_v38  ;;  %v5319_v36 = vld [vmem:[#allocation74_spill] sm:$0xff]  ;;  %v5326_v31 = vld [vmem:[#allocation19_spill] sm:$0xff] }
 0x230   :  { %2805 = vmatpush1.msra.mxu1 %v4694_v33  ;;  %3174 = vmatprep.subr.mxu0 %v5261_v16  ;;  %v2595_v33 = vadd.f32 %v2547_v53, %v2435_v3  ;;  %v2074_v55 = vsel %vm2065_vm3, %v5313_v29, %v4868_v24  ;;  %v4914_v40 = vpop.permute.xlu0 %2640  ;;  %v5322_v53 = vld [vmem:[#allocation51_spill] sm:$0xff] }
 0x231   :  { %2806 = vmatprep.subr.mxu1 %v2761_v30  ;;  %3175 = vmatpush3.msra.mxu0 %v2762_v7  ;;  %v2596_v15 = vadd.f32 %v2548_v1, %v2436_v60  ;;  %v2432_v28 = vmul.f32 %v5315_v57, %v2074_v55  ;;  %v2544_v30 = vmul.f32 %v5317_v52, %v5316_v41  ;;  %v5327_v60 = vld [vmem:[#allocation18_spill] sm:$0xff]  ;;  %v2149_v29 = vsel %vm2065_vm3, 0.0, %v5322_v53 }
 0x232   :  { %2807 = vmatpush1.msra.mxu1 %v2760_v43  ;;  %3176 = vmatprep.subr.mxu0 %v5261_v16  ;;  %v2072_v18 = vsel %vm2065_vm3, %v5322_v53, %v5321_v10  ;;  %v5331_v41 = vld [vmem:[#allocation10_spill] sm:$0xff]  ;;  %v5335_v53 = vld [vmem:[#allocation45_spill] sm:$0xff] }
 0x233   :  { %v2197_v12 = vpop.permute.xlu1 %2196  ;;  %2808 = vmatprep.subr.mxu1 %v2758_v17  ;;  %v2592_v37 = vadd.f32 %v2544_v30, %v2432_v28  ;;  %v2541_v17 = vmul.f32 %v4808_v49, %v5320_v11  ;;  %v5329_v28 = vld [vmem:[#allocation49_spill] sm:$0xff]  ;;  %v5332_v30 = vld [vmem:[#allocation72_spill] sm:$0xff]  ;;  %v5334_v11 = vld [vmem:[#allocation47_spill] sm:$0xff] }
 0x234   :  { %v2270_v22 = vsel %vm2258_vm4, %v5307_v5, %v2197_v12  ;;  %2809 = vmatpush1.msra.mxu1 %v2757_v6  ;;  %v2344_v25 = vsel %vm2258_vm4, %v2197_v12, 0.0  ;;  %v4920_v2 = vpop.permute.xlu0 %2632  ;;  %v5323_v12 = vld [vmem:[#allocation66_spill] sm:$0xff] }
 0x235   :  { %v2707_v0 = vmul.f32 %v2649_v62, %v2270_v22  ;;  %v2708_v61 = vmul.f32 %v2649_v62, %v2344_v25  ;;  %v2428_v32 = vmul.f32 %v5323_v12, %v2149_v29 }
 0x237   :  { %v4883_v47 = vpop.permute.xlu1 %2476  ;;  %v2755_v21 = vadd.f32 %v2707_v0, %v2595_v33  ;;  %v2756_v4 = vadd.f32 %v2708_v61, %v2596_v15  ;;  %v5325_v0 = vld [vmem:[#allocation80_spill] sm:$0xff] }
 0x238   :  { %v2177_v6 = vpop.permute.xlu0 %2176 }
 0x239   :  { %2810 = vmatprep.subr.mxu1 %v2755_v21 }
 0x23b   :  { %v2010_v42 = vpop.permute.xlu1 %2009 }
 0x23c   :  { %v2079_v23 = vsel %vm2065_vm3, %v5309_v20, %v2010_v42  ;;  %v4937_v25 = vpop.permute.xlu0 %2628 }
 0x23d   :  { %v2439_v54 = vmul.f32 %v5312_v39, %v2079_v23  ;;  %v2540_v39 = vmul.f32 %v4808_v49, %v5327_v60  ;;  %v5340_v60 = vld [vmem:[#allocation14_spill] sm:$0xff] }
 0x23f   :  { %v2599_v26 = vadd.f32 %v2551_v14, %v2439_v54  ;;  %v2193_v13 = vpop.permute.xlu1 %2192  ;;  %v2545_v14 = vmul.f32 %v5317_v52, %v5326_v31  ;;  %v2537_v52 = vmul.f32 %v4883_v47, %v5331_v41  ;;  %v5339_v31 = vld [vmem:[#allocation20_spill] sm:$0xff] }
 0x240   :  { %v2269_v45 = vsel %vm2258_vm4, %v2193_v13, %v5307_v5  ;;  %v5324_v5 = vld [vmem:[#allocation79_spill] sm:$0xff]  ;;  %v2175_v55 = vpop.permute.xlu0 %2174 }
 0x241   :  { %v2759_v43 = vadd.f32 %v2711_v9, %v2599_v26  ;;  %v2706_v58 = vmul.f32 %v2649_v62, %v2269_v45  ;;  %v2429_v62 = vmul.f32 %v5323_v12, %v2072_v18  ;;  %v2588_v26 = vadd.f32 %v2540_v39, %v2428_v32  ;;  %v5328_v13 = vld [vmem:[#allocation15_spill] sm:$0xff] }
 0x242   :  { %v2538_v45 = vmul.f32 %v4883_v47, %v5328_v13 }
 0x243   :  { %v2754_v34 = vadd.f32 %v2706_v58, %v5318_v56  ;;  %v2191_v48 = vpop.permute.xlu1 %2190  ;;  %3177 = vmatpush3.msra.mxu0 %v2759_v43  ;;  %v2589_v59 = vadd.f32 %v2541_v17, %v2429_v62  ;;  %v5330_v43 = vld [vmem:[#allocation44_spill] sm:$0xff]  ;;  %v2263_v56 = vsel %vm2258_vm4, %v2175_v55, %v2177_v6  ;;  %v5336_v62 = vld [vmem:[#allocation50_spill] sm:$0xff] }
 0x244   :  { %v2268_v50 = vsel %vm2258_vm4, %v5319_v36, %v2191_v48  ;;  %3178 = vmatprep.subr.mxu0 %v5261_v16  ;;  %v2343_v23 = vsel %vm2258_vm4, %v2191_v48, 0.0  ;;  %v2070_v58 = vsel %vm2065_vm3, %v5330_v43, %v5329_v28 }
 0x245   :  { %v2704_v51 = vmul.f32 %v4833_v35, %v2268_v50  ;;  %2811 = vmatpush1.msra.mxu1 %v2754_v34  ;;  %3179 = vmatpush3.msra.mxu0 %v2756_v4  ;;  %v2705_v1 = vmul.f32 %v4833_v35, %v2343_v23  ;;  %v2426_v4 = vmul.f32 %v5332_v30, %v2070_v58  ;;  %v2173_v50 = vpop.permute.xlu0 %2172  ;;  %v5338_v23 = vld [vmem:[#allocation13_spill] sm:$0xff] }
 0x246   :  { %3180 = vmatprep.subr.mxu0 %v5261_v16 }
 0x247   :  { %v4916_v63 = vpop.permute.xlu1 %2472  ;;  %v2752_v44 = vadd.f32 %v2704_v51, %v2592_v37 }
 0x248   :  { %v2535_v39 = vmul.f32 %v4916_v63, %v5340_v60  ;;  %v2787_v60 = vld [vmem:[%s5061_s4] sm:$0xff] }
 0x249   :  { %2812 = vmatprep.subr.mxu1 %v2752_v44  ;;  %v2586_v44 = vadd.f32 %v2538_v45, %v2426_v4  ;;  %v5343_v4 = vld [vmem:[#allocation5_spill] sm:$0xff] }
 0x24c   :  { %v4918_v46 = vpop.permute.xlu1 %2636 }
 0x24d   :  { %v2697_v37 = vmul.f32 %v4918_v46, %v2263_v56 }
 0x250   :  { %v2187_v3 = vpop.permute.xlu1 %2186 }
 0x251   :  { %v2267_v7 = vsel %vm2258_vm4, %v2187_v3, %v5319_v36 }
 0x252   :  { %v2703_v27 = vmul.f32 %v4833_v35, %v2267_v7  ;;  %v2148_v35 = vsel %vm2065_vm3, 0.0, %v5330_v43  ;;  %v5333_v7 = vld [vmem:[#allocation46_spill] sm:$0xff] }
 0x253   :  { %v2425_v36 = vmul.f32 %v5332_v30, %v2148_v35  ;;  %v2068_v17 = vsel %vm2065_vm3, %v5334_v11, %v5333_v7  ;;  %v2069_v18 = vsel %vm2065_vm3, %v5333_v7, %v5335_v53  ;;  %v5347_v7 = vld [vmem:[#allocation43_spill] sm:$0xff]  ;;  %v5349_v53 = vld [vmem:[#allocation52_spill] sm:$0xff] }
 0x254   :  { %v2751_v22 = vadd.f32 %v2703_v27, %v5324_v5  ;;  %v2185_v33 = vpop.permute.xlu1 %2184  ;;  %v2071_v5 = vsel %vm2065_vm3, %v5329_v28, %v5336_v62 }
 0x255   :  { %v2266_v21 = vsel %vm2258_vm4, %v5325_v0, %v2185_v33  ;;  %v2585_v27 = vadd.f32 %v2537_v52, %v2425_v36  ;;  %v2427_v29 = vmul.f32 %v5332_v30, %v2071_v5 }
 0x256   :  { %v2701_v19 = vmul.f32 %v4914_v40, %v2266_v21  ;;  %2813 = vmatpush1.msra.mxu1 %v2751_v22 }
 0x258   :  { %v4935_v42 = vpop.permute.xlu1 %2468  ;;  %v2749_v38 = vadd.f32 %v2701_v19, %v2589_v59  ;;  %v2745_v59 = vadd.f32 %v2697_v37, %v2585_v27  ;;  %v2342_v19 = vsel %vm2258_vm4, %v2185_v33, 0.0  ;;  %v5341_v33 = vld [vmem:[#allocation76_spill] sm:$0xff] }
 0x259   :  { %v2423_v55 = vmul.f32 %v5341_v33, %v2068_v17  ;;  %v2424_v32 = vmul.f32 %v5341_v33, %v2069_v18  ;;  %v5348_v17 = vld [vmem:[#allocation42_spill] sm:$0xff] }
 0x25a   :  { %2814 = vmatprep.subr.mxu1 %v2749_v38  ;;  %v2067_v27 = vsel %vm2065_vm3, %v5347_v7, %v5348_v17 }
 0x25c   :  { %v1998_v20 = vpop.permute.xlu1 %1997 }
 0x25d   :  { %v2075_v8 = vsel %vm2065_vm3, %v4868_v24, %v1998_v20 }
 0x25e   :  { %v2433_v54 = vmul.f32 %v5315_v57, %v2075_v8  ;;  %v2542_v8 = vmul.f32 %v4808_v49, %v5338_v23  ;;  %v2702_v49 = vmul.f32 %v4914_v40, %v2342_v19 }
 0x260   :  { %v2593_v9 = vadd.f32 %v2545_v14, %v2433_v54  ;;  %v2181_v61 = vpop.permute.xlu1 %2180  ;;  %v2539_v14 = vmul.f32 %v4883_v47, %v5339_v31 }
 0x261   :  { %v2265_v24 = vsel %vm2258_vm4, %v2181_v61, %v5325_v0 }
 0x262   :  { %v2753_v15 = vadd.f32 %v2705_v1, %v2593_v9  ;;  %v2700_v57 = vmul.f32 %v4914_v40, %v2265_v24  ;;  %v2165_v1 = vpop.permute.xlu0 %2164  ;;  %v5342_v24 = vld [vmem:[#allocation11_spill] sm:$0xff] }
 0x264   :  { %v2748_v34 = vadd.f32 %v2700_v57, %v2588_v26  ;;  %v2179_v48 = vpop.permute.xlu1 %2178  ;;  %3181 = vmatpush3.msra.mxu0 %v2753_v15  ;;  %v2534_v26 = vmul.f32 %v4916_v63, %v5342_v24  ;;  %v2587_v15 = vadd.f32 %v2539_v14, %v2427_v29  ;;  %v2583_v57 = vadd.f32 %v2535_v39, %v2423_v55  ;;  %v2961_v29 = vld [vmem:[%s5063_s6] sm:$0x7]  ;;  %s2788_s6 = sld [smem:[#allocation2]] }
 0x265   :  { %v2264_v51 = vsel %vm2258_vm4, %v2177_v6, %v2179_v48  ;;  %3182 = vmatprep.subr.mxu0 %v5261_v16  ;;  %v5337_v6 = vld [vmem:[#allocation9_spill] sm:$0xff]  ;;  %v2341_v38 = vsel %vm2258_vm4, %v2179_v48, 0.0 }
 0x266   :  { %v2698_v3 = vmul.f32 %v4918_v46, %v2264_v51  ;;  %2815 = vmatpush1.msra.mxu1 %v2748_v34  ;;  %v2536_v22 = vmul.f32 %v4916_v63, %v5337_v6  ;;  %v2699_v47 = vmul.f32 %v4918_v46, %v2341_v38  ;;  %v2163_v30 = vpop.permute.xlu0 %2162  ;;  %v2531_v63 = vmul.f32 %v4935_v42, %v5343_v4  ;;  %v5344_v48 = vld [vmem:[#allocation41_spill] sm:$0xff]  ;;  %v5346_v51 = vld [vmem:[#allocation7_spill] sm:$0xff] }
 0x267   :  { %v2146_v36 = vsel %vm2065_vm3, 0.0, %v5344_v48 }
 0x268   :  { %v1992_v0 = vpop.permute.xlu1 %1991  ;;  %v2746_v21 = vadd.f32 %v2698_v3, %v2586_v44  ;;  %v2584_v13 = vadd.f32 %v2536_v22, %v2424_v32  ;;  %v2747_v58 = vadd.f32 %v2699_v47, %v2587_v15  ;;  %v2533_v44 = vmul.f32 %v4935_v42, %v5346_v51 }
 0x269   :  { %v2073_v20 = vsel %vm2065_vm3, %v5321_v10, %v1992_v0  ;;  %v2340_v10 = vsel %vm2258_vm4, %v2173_v50, 0.0  ;;  %v2419_v18 = vmul.f32 %v5349_v53, %v2146_v36 }
 0x26a   :  { %v2430_v54 = vmul.f32 %v5323_v12, %v2073_v20  ;;  %2816 = vmatprep.subr.mxu1 %v2746_v21  ;;  %v2147_v12 = vsel %vm2065_vm3, 0.0, %v5334_v11  ;;  %v2696_v46 = vmul.f32 %v4920_v2, %v2340_v10  ;;  %v2066_v11 = vsel %vm2065_vm3, %v5344_v48, %v5347_v7  ;;  %v2959_v10 = vld [vmem:[%s5058_s1 + $0x8] sm:$0xff] }
 0x26b   :  { %2817 = vmatpush1.msra.mxu1 %v2745_v59  ;;  %v2422_v40 = vmul.f32 %v5341_v33, %v2147_v12  ;;  %v2420_v62 = vmul.f32 %v5349_v53, %v2066_v11  ;;  %v2579_v22 = vadd.f32 %v2531_v63, %v2419_v18 }
 0x26c   :  { %v2590_v9 = vadd.f32 %v2542_v8, %v2430_v54  ;;  %v2171_v61 = vpop.permute.xlu1 %2170  ;;  %v2744_v34 = vadd.f32 %v2696_v46, %v2584_v13  ;;  %v2789_v13 = vstv %s2788_s6 }
 0x26d   :  { %v2262_v45 = vsel %vm2258_vm4, %v2171_v61, %v2173_v50  ;;  %v2582_v35 = vadd.f32 %v2534_v26, %v2422_v40  ;;  %v5345_v50 = vld [vmem:[#allocation6_spill] sm:$0xff] }
 0x26e   :  { %v2750_v28 = vadd.f32 %v2702_v49, %v2590_v9  ;;  %v2695_v43 = vmul.f32 %v4920_v2, %v2262_v45  ;;  %v2532_v37 = vmul.f32 %v4935_v42, %v5345_v50  ;;  %v2421_v42 = vmul.f32 %v5349_v53, %v2067_v27  ;;  %v2960_v49 = vld [vmem:[%s5058_s1 + $0x10] sm:$0xff]  ;;  %v2934_v45 = vld [vmem:[%s5062_s5] sm:$0x7] }
 0x270   :  { %v2169_v41 = vpop.permute.xlu1 %2168  ;;  %3183 = vmatpush3.msra.mxu0 %v2750_v28  ;;  %v2743_v52 = vadd.f32 %v2695_v43, %v2583_v57  ;;  %v2580_v59 = vadd.f32 %v2532_v37, %v2420_v62  ;;  %v2581_v19 = vadd.f32 %v2533_v44, %v2421_v42 }
 0x271   :  { %v2261_v56 = vsel %vm2258_vm4, %v2169_v41, %v2171_v61  ;;  %3184 = vmatprep.subr.mxu0 %v5261_v16 }
 0x272   :  { %v2694_v3 = vmul.f32 %v4920_v2, %v2261_v56  ;;  %2818 = vmatprep.subr.mxu1 %v2743_v52  ;;  %3185 = vmatpush3.msra.mxu0 %v2747_v58  ;;  %v2259_v2 = vsel %vm2258_vm4, %v2163_v30, %v2165_v1 }
 0x273   :  { %3186 = vmatprep.subr.mxu0 %v5261_v16  ;;  %v2691_v23 = vmul.f32 %v4937_v25, %v2259_v2 }
 0x274   :  { %v2742_v5 = vadd.f32 %v2694_v3, %v2582_v35  ;;  %v2167_v6 = vpop.permute.xlu1 %2166  ;;  %3187 = vmatpush3.msra.mxu0 %v2744_v34 }
 0x275   :  { %v2260_v0 = vsel %vm2258_vm4, %v2165_v1, %v2167_v6  ;;  %v2339_v21 = vsel %vm2258_vm4, %v2167_v6, 0.0  ;;  %3188 = vmatprep.subr.mxu0 %v5261_v16  ;;  %v2739_v14 = vadd.f32 %v2691_v23, %v2579_v22  ;;  %v5350_v16 = vlaneseq  ;;  %v2958_v1 = vld [vmem:[%s5058_s1] sm:$0xff]  ;;  %s3052_s1 = sld [smem:[#allocation2 + $0x1]] }
 0x276   :  { %v2692_v38 = vmul.f32 %v4937_v25, %v2260_v0  ;;  %v2693_v20 = vmul.f32 %v4937_v25, %v2339_v21  ;;  %2819 = vmatpush1.msra.mxu1 %v2742_v5 }
 0x277   :  { %v2937_v39 = vshrl.u32 %v5350_v16, 7 }
 0x278   :  { %v2741_v8 = vadd.f32 %v2693_v20, %v2581_v19  ;;  %v2740_v31 = vadd.f32 %v2692_v38, %v2580_v59 }
 0x279   :  { %v2938_v54 = vsub.s32 0, %v2937_v39  ;;  %v2942_v25 = vsub.s32 1, %v2937_v39  ;;  %v2946_v32 = vsub.s32 2, %v2937_v39 }
 0x27a   :  { %2820 = vmatprep.subr.mxu1 %v2740_v31  ;;  %3189 = vmatpush3.msra.mxu0 %v2741_v8 }
 0x27b   :  { %2821 = vmatpush1.msra.mxu1 %v2739_v14  ;;  %3191 = vmatmul.mubr.f32.vlgmr.msra.gmra.mxu0 %v2787_v60  ;;  %v2966_v33 = vrot.slane %v2961_v29, %v2938_v54  ;;  %v2970_v55 = vrot.slane %v2961_v29, %v2942_v25  ;;  %v2974_v9 = vrot.slane %v2961_v29, %v2946_v32  ;;  %v2987_v51 = vstv %s3052_s1 }
 0x27c   :  { %2855 = vmatmul.mubr.f32.vlgmr.msra.gmra.mxu1 %v2787_v60  ;;  %v2939_v46 = vrot.slane %v2934_v45, %v2938_v54  ;;  %v2943_v41 = vrot.slane %v2934_v45, %v2942_v25  ;;  %v2947_v4 = vrot.slane %v2934_v45, %v2946_v32 }
 0x27d   :  { %v2978_v47 = vmul.f32 %v2966_v33, %v2958_v1  ;;  %v2979_v61 = vmul.f32 %v2970_v55, %v2959_v10  ;;  %v2980_v12 = vmul.f32 %v2974_v9, %v2960_v49 }
 0x27f   :  { %v2981_v24 = vadd.f32 %v2979_v61, %v2978_v47 }
 0x281   :  { %v2982_v26 = vadd.f32 %v2981_v24, %v2980_v12 }
 0x283   :  { %2983 = vadd.xlane.f32.xlu0 %v2982_v26 }
 0x30c   :  { %v2984_v37 = vpop.xlane.xlu0 %2983 }
 0x33b   :  { %v2927_v15 = vpop.f32.mrf.mxu0 }
 0x33c   :  { %v2856_v57 = vpop.f32.mrf.mxu1  ;;  %v2928_v28 = vadd.f32 %v2927_v15, %v2789_v13 }
 0x33d   :  { %v2857_v43 = vadd.f32 %v2856_v57, %v2789_v13  ;;  %v3192_v40 = vpop.f32.mrf.mxu0 }
 0x33e   :  { %v2858_v58 = vpop.f32.mrf.mxu1  ;;  %v2933_v30 = vmax.f32 %v2928_v28, 0.0 }
 0x33f   :  { %v2931_v52 = vmax.f32 %v2857_v43, 0.0  ;;  %v2859_v35 = vadd.f32 %v2858_v58, %v2789_v13 }
 0x340   :  { %v2953_v48 = vmul.f32 %v2947_v4, %v2933_v30 }
 0x341   :  { %v2932_v63 = vmax.f32 %v2859_v35, 0.0  ;;  %v2951_v56 = vmul.f32 %v2939_v46, %v2931_v52 }
 0x343   :  { %v2952_v34 = vmul.f32 %v2943_v41, %v2932_v63 }
 0x345   :  { %v2954_v36 = vadd.f32 %v2952_v34, %v2951_v56 }
 0x347   :  { %v2955_v50 = vadd.f32 %v2954_v36, %v2953_v48 }
 0x349   :  { %2956 = vadd.xlane.f32.xlu1 %v2955_v50 }
 0x3d2   :  { %v2957_v44 = vpop.xlane.xlu1 %2956 }
 0x3d3   :  { %v2985_v3 = vadd.f32 %v2984_v37, %v2957_v44 }
 0x3d5   :  { %v2988_v7 = vadd.f32 %v2987_v51, %v2985_v3 }
 0x3d7   :  { %2989 = vst.msk [vmem:[%s5065_s8] sm:$0xff] %vm2065_vm3, %v2988_v7 }
 0x3d8   :  { %2994 = vsyncpa [#allocation3], 1 }

</bundles_post_ra>
